<compile_context>
chip_gen: v5e
topology: v5e:2x2
jax: 0.10.0
libtpu: 0.0.40
codegen_flags: <defaults>
</compile_context>

<pallas_src>
import functools
import math

import jax
import jax.numpy as jnp
from jax import lax
from jax.experimental import pallas as pl
from jax.experimental.pallas import tpu as pltpu


def _static_pow(x, p):
    """x ** p for a static python float p (alpha / beta of the assigner).

    Integer powers use exponentiation-by-squaring (beta=6 -> 3 multiplies)."""
    p = float(p)
    if p == 1.0:
        return x
    if p == int(p) and p > 0:
        n = int(p)
        result = None
        base = x
        while n > 0:
            if n & 1:
                result = base if result is None else result * base
            n >>= 1
            if n:
                base = base * base
        return result
    return jnp.exp(p * jnp.log(x))


def _tal_kernel(pd_cls_ref, pd_geo_ref, gt_pack_ref, misc_ref, ts_ref,
                *, topk, alpha, beta, eps):
    f32 = jnp.float32
    C = pd_cls_ref.shape[1]
    A = pd_cls_ref.shape[2]
    N = gt_pack_ref.shape[1]
    eps_iou = 1e-7

    pd_s = pd_cls_ref[0]                       # (C, A) class-major pred scores
    geo = pd_geo_ref[0]                        # (8, A) packed per-anchor geometry
    gtp = gt_pack_ref[0]                       # (N, 8) packed per-gt values

    # predicted-box geometry (coord-major, anchors on lanes)
    b2_x1 = geo[0:1, :]; b2_y1 = geo[1:2, :]
    b2_x2 = geo[2:3, :]; b2_y2 = geo[3:4, :]
    atan_pd = geo[4:5, :]
    xc = geo[5:6, :]; yc = geo[6:7, :]

    # gt-box geometry and per-gt scalars (gts on sublanes)
    b1_x1 = gtp[:, 0:1]; b1_y1 = gtp[:, 1:2]
    b1_x2 = gtp[:, 2:3]; b1_y2 = gtp[:, 3:4]
    labels_col = gtp[:, 4:5]                   # (N, 1) float labels
    mask_gt_col = gtp[:, 5:6]                  # (N, 1)
    atan_gt = gtp[:, 6:7]                      # (N, 1)

    iota_a = lax.broadcasted_iota(jnp.int32, (1, A), 1).astype(f32)
    iota_n = lax.broadcasted_iota(jnp.int32, (N, 1), 0).astype(f32)
    iota_c = lax.broadcasted_iota(jnp.int32, (C, 1), 0).astype(f32)

    # ---- bbox_scores[n, a] = pd_scores[a, label_n]
    # Exact f32 gather: unrolled select over the small class axis (VPU only).
    # TODO(synk): for large C / production A, switch back to a one-hot MXU
    # matmul with HIGHEST precision and tile the anchor axis.
    bbox_scores = jnp.zeros((N, A), f32)
    for c in range(C):
        bbox_scores = bbox_scores + jnp.where(labels_col == float(c),
                                              pd_s[c:c + 1, :], 0.0)

    # ---- pairwise CIoU between gt (rows) and predicted (cols) boxes
    w1 = b1_x2 - b1_x1; h1 = b1_y2 - b1_y1 + eps_iou
    w2 = b2_x2 - b2_x1; h2 = b2_y2 - b2_y1 + eps_iou
    inter = (jnp.maximum(jnp.minimum(b1_x2, b2_x2) - jnp.maximum(b1_x1, b2_x1), 0.0) *
             jnp.maximum(jnp.minimum(b1_y2, b2_y2) - jnp.maximum(b1_y1, b2_y1), 0.0))
    union = w1 * h1 + w2 * h2 - inter + eps_iou
    iou = inter / union
    cw = jnp.maximum(b1_x2, b2_x2) - jnp.minimum(b1_x1, b2_x1)
    ch = jnp.maximum(b1_y2, b2_y2) - jnp.minimum(b1_y1, b2_y1)
    c2 = cw * cw + ch * ch + eps_iou
    rho2 = ((b2_x1 + b2_x2 - b1_x1 - b1_x2) ** 2 +
            (b2_y1 + b2_y2 - b1_y1 - b1_y2) ** 2) / 4.0
    v = (4.0 / (math.pi ** 2)) * (atan_pd - atan_gt) ** 2        # (N, A)
    a_ciou = v / (v - iou + (1.0 + eps_iou))
    ciou = iou - (rho2 / c2 + v * a_ciou)
    overlaps = jnp.maximum(ciou, 0.0)                            # (N, A)

    align_metric = _static_pow(bbox_scores, alpha) * _static_pow(overlaps, beta)

    # ---- anchor centers inside gt boxes
    dmin = jnp.minimum(jnp.minimum(xc - b1_x1, yc - b1_y1),
                       jnp.minimum(b1_x2 - xc, b1_y2 - yc))
    mask_in_gts = (dmin > eps).astype(f32)                       # (N, A)

    # ---- top-k candidate selection (iterative argmax, first-index tie-break).
    # Invalid gt rows are zeroed later via mask_pos *= mask_gt (equivalent to
    # the reference's topk_mask handling for the final outputs).
    metrics = align_metric * mask_in_gts

    def topk_body(_, carry):
        work, count = carry
        cur_max = jnp.max(work, axis=-1, keepdims=True)          # (N, 1)
        cand = jnp.where(work == cur_max, iota_a, float(A))
        arg = jnp.min(cand, axis=-1, keepdims=True)              # (N, 1)
        hit = iota_a == arg
        count = count + hit.astype(f32)
        work = jnp.where(hit, -1e30, work)
        return work, count

    _, count = lax.fori_loop(0, topk, topk_body,
                             (metrics, jnp.zeros_like(metrics)),
                             unroll=True)
    is_in_topk = jnp.where(count > 1.0, 0.0, count)              # (N, A)

    mask_pos = is_in_topk * mask_in_gts * mask_gt_col            # (N, A)

    # ---- resolve anchors assigned to multiple gts (keep highest CIoU)
    fg_row = jnp.sum(mask_pos, axis=0, keepdims=True)            # (1, A)
    max_ovl = jnp.max(overlaps, axis=0, keepdims=True)
    ovl_cand = jnp.where(overlaps == max_ovl, iota_n, float(N))
    max_ovl_idx = jnp.min(ovl_cand, axis=0, keepdims=True)       # (1, A)
    is_max_ovl = (iota_n == max_ovl_idx).astype(f32)             # (N, A)
    mask_pos = jnp.where(fg_row > 1.0, is_max_ovl, mask_pos)
    fg_row = jnp.sum(mask_pos, axis=0, keepdims=True)

    # ---- per-anchor assigned gt (argmax over gts, first-index tie-break)
    max_mp = jnp.max(mask_pos, axis=0, keepdims=True)
    tgt_cand = jnp.where(mask_pos == max_mp, iota_n, float(N))
    tgt_idx = jnp.min(tgt_cand, axis=0, keepdims=True)           # (1, A)
    onehot_tgt = (iota_n == tgt_idx).astype(f32)                 # (N, A)

    # ---- gather target [x1, y1, x2, y2, label] exactly:
    # one-hot masked sublane sums (XLU), no transposes, no precision loss.
    def gather_col(j):
        return jnp.sum(onehot_tgt * gtp[:, j:j + 1], axis=0, keepdims=True)

    tb_rows = [gather_col(j) for j in range(4)]                  # 4 x (1, A)
    tl_row = jnp.maximum(gather_col(4), 0.0)                     # (1, A) clamp(0)

    # ---- normalized align metric and target scores
    am = align_metric * mask_pos
    ovl_m = overlaps * mask_pos
    pos_align = jnp.max(am, axis=-1, keepdims=True)              # (N, 1)
    pos_ovl = jnp.max(ovl_m, axis=-1, keepdims=True)             # (N, 1)
    norm_row = jnp.max(am * (pos_ovl / (pos_align + eps)),
                       axis=0, keepdims=True)                    # (1, A)
    factor_row = jnp.where(fg_row > 0.0, norm_row, 0.0)          # fg mask * norm

    # target scores: one-hot of the gathered label, scaled (lane-dense store)
    ts_ref[0] = jnp.where(iota_c == tl_row, factor_row, 0.0)     # (C, A)

    # packed misc output: [label, fg, x1, y1, x2, y2, 0, 0] as one (8, A) tile
    misc_ref[0, 0:1, :] = tl_row
    misc_ref[0, 1:2, :] = fg_row
    misc_ref[0, 2:3, :] = tb_rows[0]
    misc_ref[0, 3:4, :] = tb_rows[1]
    misc_ref[0, 4:5, :] = tb_rows[2]
    misc_ref[0, 5:6, :] = tb_rows[3]
    misc_ref[0, 6:8, :] = jnp.zeros((2, A), f32)


def task_aligned_assigner(pd_scores, pd_bboxes, anc_points, gt_labels, gt_bboxes,
                          mask_gt, topk=13, num_classes=80, alpha=1.0, beta=6.0,
                          eps=1e-9):
    bs, A, C = pd_scores.shape
    N = gt_bboxes.shape[1]
    assert C == num_classes
    f32 = jnp.float32
    if N == 0:
        return (jnp.full((bs, A), num_classes, jnp.int32),
                jnp.zeros_like(pd_bboxes),
                jnp.zeros_like(pd_scores),
                jnp.zeros((bs, A), jnp.bool_))

    eps_iou = 1e-7
    pd_scores = pd_scores.astype(f32)
    pd_bboxes = pd_bboxes.astype(f32)
    gt_bboxes = gt_bboxes.astype(f32)

    # ---- glue: lane-dense packed operands (anchors on the lane axis)
    pd_cls = jnp.transpose(pd_scores, (0, 2, 1))                           # (bs, C, A)
    atan_pd = jnp.arctan((pd_bboxes[..., 2] - pd_bboxes[..., 0]) /
                         (pd_bboxes[..., 3] - pd_bboxes[..., 1] + eps_iou))
    anc_rows = jnp.broadcast_to(
        jnp.transpose(anc_points.astype(f32), (1, 0))[None], (bs, 2, A))
    pd_geo = jnp.concatenate([
        jnp.transpose(pd_bboxes, (0, 2, 1)),                               # x1,y1,x2,y2
        atan_pd[:, None, :],                                               # atan(w/h)
        anc_rows,                                                          # anchor x, y
        jnp.zeros((bs, 1, A), f32),                                        # pad -> 8 rows
    ], axis=1)                                                             # (bs, 8, A)

    labels_f = gt_labels.reshape(bs, N).astype(f32)[..., None]             # (bs, N, 1)
    mask_gt_f = mask_gt.astype(f32).reshape(bs, N, 1)
    atan_gt = jnp.arctan((gt_bboxes[..., 2] - gt_bboxes[..., 0]) /
                         (gt_bboxes[..., 3] - gt_bboxes[..., 1] + eps_iou))[..., None]
    gt_pack = jnp.concatenate([gt_bboxes, labels_f, mask_gt_f, atan_gt,
                               jnp.zeros((bs, N, 1), f32)], axis=-1)       # (bs, N, 8)

    kern = functools.partial(_tal_kernel, topk=topk, alpha=alpha, beta=beta, eps=eps)
    b_map = lambda b: (b, 0, 0)
    # TODO(synk): for production sizes (A~8400, N>=128) on v7x (64 MiB VMEM),
    # add a second grid axis tiling A with a running top-k / row-max carry in
    # VMEM scratch and a short finalize step; not needed at these shapes.
    misc, ts = pl.pallas_call(
        kern,
        grid=(bs,),
        in_specs=[pl.BlockSpec((1, C, A), b_map),    # class-major pred scores
                  pl.BlockSpec((1, 8, A), b_map),    # packed per-anchor geometry
                  pl.BlockSpec((1, N, 8), b_map)],   # packed per-gt values
        out_specs=(pl.BlockSpec((1, 8, A), b_map),   # [label, fg, bbox(4), pad(2)]
                   pl.BlockSpec((1, C, A), b_map)),  # target scores (lane-dense)
        out_shape=(jax.ShapeDtypeStruct((bs, 8, A), f32),
                   jax.ShapeDtypeStruct((bs, C, A), f32)),
        compiler_params=pltpu.CompilerParams(
            dimension_semantics=("parallel",),
            vmem_limit_bytes=32 * 1024 * 1024),
    )(pd_cls, pd_geo, gt_pack)

    target_labels = misc[:, 0, :].astype(jnp.int32)                        # (bs, A)
    fg_mask = misc[:, 1, :] > 0                                            # (bs, A)
    target_bboxes = jnp.transpose(misc[:, 2:6, :], (0, 2, 1))              # (bs, A, 4)
    target_scores = jnp.transpose(ts, (0, 2, 1))                           # (bs, A, C)
    return target_labels, target_bboxes, target_scores, fg_mask


if __name__ == "__main__":
    key = jax.random.PRNGKey(0)
    bs, A, C, N, topk = 2, 128, 16, 8, 13
    k1, k2, k3, k4, k5, k6 = jax.random.split(key, 6)

    # anchor centers of a 16x8 feature grid, stride 8
    gx = (jnp.arange(16, dtype=jnp.float32) + 0.5) * 8.0
    gy = (jnp.arange(8, dtype=jnp.float32) + 0.5) * 8.0
    xx, yy = jnp.meshgrid(gx, gy)
    anc_points = jnp.stack([xx.reshape(-1), yy.reshape(-1)], axis=-1)       # (128, 2)

    pd_scores = jax.nn.sigmoid(jax.random.normal(k1, (bs, A, C), jnp.float32))
    wh_p = 4.0 + 28.0 * jax.random.uniform(k2, (bs, A, 2), dtype=jnp.float32)
    ctr_p = anc_points[None] + 4.0 * jax.random.normal(k3, (bs, A, 2), jnp.float32)
    pd_bboxes = jnp.concatenate([ctr_p - wh_p / 2.0, ctr_p + wh_p / 2.0], axis=-1)

    ctr_gx = 8.0 + 112.0 * jax.random.uniform(k4, (bs, N), dtype=jnp.float32)
    ctr_gy = 8.0 + 48.0 * jax.random.uniform(k5, (bs, N), dtype=jnp.float32)
    ctr_g = jnp.stack([ctr_gx, ctr_gy], axis=-1)
    wh_g = 8.0 + 40.0 * jax.random.uniform(k6, (bs, N, 2), dtype=jnp.float32)
    gt_bboxes = jnp.concatenate([ctr_g - wh_g / 2.0, ctr_g + wh_g / 2.0], axis=-1)
    gt_labels = jax.random.randint(jax.random.PRNGKey(7), (bs, N, 1), 0, C)
    n_valid = jnp.array([6, 4])
    mask_gt = (jnp.arange(N)[None, :, None] < n_valid[:, None, None]).astype(jnp.float32)

    tl, tb, ts, fg = task_aligned_assigner(pd_scores, pd_bboxes, anc_points,
                                           gt_labels, gt_bboxes, mask_gt,
                                           topk=topk, num_classes=C)
    jax.block_until_ready((tl, tb, ts, fg))
    print("KERNEL_OK")
</pallas_src>

<mosaic_0001>
module attributes {stable_mosaic.version = 11 : i64} {
  func.func @_tal_kernel(%arg0: i32, %arg1: memref<1x16x128xf32, #tpu.memory_space<vmem>>, %arg2: memref<1x8x128xf32, #tpu.memory_space<vmem>>, %arg3: memref<1x8x8xf32, #tpu.memory_space<vmem>>, %arg4: memref<1x8x128xf32, #tpu.memory_space<vmem>>, %arg5: memref<1x16x128xf32, #tpu.memory_space<vmem>>) attributes {dimension_semantics = [#tpu.dimension_semantics<parallel>], iteration_bounds = array<i64: 2>, scalar_prefetch = 0 : i64, scratch_operands = 0 : i64, tpu.core_type = #tpu.core_type<tc>, window_params = [{transform_indices = @transform_0, window_bounds = array<i64: 1, 16, 128>}, {transform_indices = @transform_1, window_bounds = array<i64: 1, 8, 128>}, {transform_indices = @transform_2, window_bounds = array<i64: 1, 8, 8>}, {transform_indices = @transform_3, window_bounds = array<i64: 1, 8, 128>}, {transform_indices = @transform_4, window_bounds = array<i64: 1, 16, 128>}]} {
    %c0 = arith.constant 0 : index
    %c0_0 = arith.constant 0 : index
    %c0_1 = arith.constant 0 : index
    %0 = vector.load %arg1[%c0, %c0_0, %c0_1] : memref<1x16x128xf32, #tpu.memory_space<vmem>>, vector<1x16x128xf32>
    %1 = vector.shape_cast %0 : vector<1x16x128xf32> to vector<16x128xf32>
    %c0_2 = arith.constant 0 : index
    %c0_3 = arith.constant 0 : index
    %c0_4 = arith.constant 0 : index
    %2 = vector.load %arg2[%c0_2, %c0_3, %c0_4] : memref<1x8x128xf32, #tpu.memory_space<vmem>>, vector<1x8x128xf32>
    %3 = vector.shape_cast %2 : vector<1x8x128xf32> to vector<8x128xf32>
    %c0_5 = arith.constant 0 : index
    %c0_6 = arith.constant 0 : index
    %c0_7 = arith.constant 0 : index
    %4 = vector.load %arg3[%c0_5, %c0_6, %c0_7] : memref<1x8x8xf32, #tpu.memory_space<vmem>>, vector<1x8x8xf32>
    %5 = vector.shape_cast %4 : vector<1x8x8xf32> to vector<8x8xf32>
    %6 = vector.extract_strided_slice %3 {offsets = [0, 0], sizes = [1, 128], strides = [1, 1]} : vector<8x128xf32> to vector<1x128xf32>
    %7 = vector.extract_strided_slice %3 {offsets = [1, 0], sizes = [1, 128], strides = [1, 1]} : vector<8x128xf32> to vector<1x128xf32>
    %8 = vector.extract_strided_slice %3 {offsets = [2, 0], sizes = [1, 128], strides = [1, 1]} : vector<8x128xf32> to vector<1x128xf32>
    %9 = vector.extract_strided_slice %3 {offsets = [3, 0], sizes = [1, 128], strides = [1, 1]} : vector<8x128xf32> to vector<1x128xf32>
    %10 = vector.extract_strided_slice %3 {offsets = [4, 0], sizes = [1, 128], strides = [1, 1]} : vector<8x128xf32> to vector<1x128xf32>
    %11 = vector.extract_strided_slice %3 {offsets = [5, 0], sizes = [1, 128], strides = [1, 1]} : vector<8x128xf32> to vector<1x128xf32>
    %12 = vector.extract_strided_slice %3 {offsets = [6, 0], sizes = [1, 128], strides = [1, 1]} : vector<8x128xf32> to vector<1x128xf32>
    %13 = vector.extract_strided_slice %5 {offsets = [0, 0], sizes = [8, 1], strides = [1, 1]} : vector<8x8xf32> to vector<8x1xf32>
    %14 = vector.extract_strided_slice %5 {offsets = [0, 1], sizes = [8, 1], strides = [1, 1]} : vector<8x8xf32> to vector<8x1xf32>
    %15 = vector.extract_strided_slice %5 {offsets = [0, 2], sizes = [8, 1], strides = [1, 1]} : vector<8x8xf32> to vector<8x1xf32>
    %16 = vector.extract_strided_slice %5 {offsets = [0, 3], sizes = [8, 1], strides = [1, 1]} : vector<8x8xf32> to vector<8x1xf32>
    %17 = vector.extract_strided_slice %5 {offsets = [0, 4], sizes = [8, 1], strides = [1, 1]} : vector<8x8xf32> to vector<8x1xf32>
    %18 = vector.extract_strided_slice %5 {offsets = [0, 5], sizes = [8, 1], strides = [1, 1]} : vector<8x8xf32> to vector<8x1xf32>
    %19 = vector.extract_strided_slice %5 {offsets = [0, 6], sizes = [8, 1], strides = [1, 1]} : vector<8x8xf32> to vector<8x1xf32>
    %20 = tpu.iota {dimensions = array<i32: 1>} : vector<1x128xi32>
    %21 = arith.sitofp %20 : vector<1x128xi32> to vector<1x128xf32>
    %22 = tpu.iota {dimensions = array<i32: 0>} : vector<8x1xi32>
    %23 = arith.sitofp %22 : vector<8x1xi32> to vector<8x1xf32>
    %24 = tpu.iota {dimensions = array<i32: 0>} : vector<16x1xi32>
    %25 = arith.sitofp %24 : vector<16x1xi32> to vector<16x1xf32>
    %cst = arith.constant 0.000000e+00 : f32
    %26 = vector.broadcast %cst : f32 to vector<8x128xf32>
    %cst_8 = arith.constant 0.000000e+00 : f32
    %27 = vector.broadcast %cst_8 : f32 to vector<8x1xf32>
    %28 = arith.cmpf oeq, %17, %27 : vector<8x1xf32>
    %29 = vector.extract_strided_slice %1 {offsets = [0, 0], sizes = [1, 128], strides = [1, 1]} : vector<16x128xf32> to vector<1x128xf32>
    %cst_9 = arith.constant 0.000000e+00 : f32
    %30 = vector.shape_cast %28 : vector<8x1xi1> to vector<8x1xi1>
    %31 = vector.broadcast %30 : vector<8x1xi1> to vector<8x128xi1>
    %32 = vector.shape_cast %29 : vector<1x128xf32> to vector<1x128xf32>
    %33 = vector.broadcast %32 : vector<1x128xf32> to vector<8x128xf32>
    %34 = vector.broadcast %cst_9 : f32 to vector<8x128xf32>
    %35 = arith.select %31, %33, %34 : vector<8x128xi1>, vector<8x128xf32>
    %36 = arith.addf %26, %35 : vector<8x128xf32>
    %cst_10 = arith.constant 1.000000e+00 : f32
    %37 = vector.broadcast %cst_10 : f32 to vector<8x1xf32>
    %38 = arith.cmpf oeq, %17, %37 : vector<8x1xf32>
    %39 = vector.extract_strided_slice %1 {offsets = [1, 0], sizes = [1, 128], strides = [1, 1]} : vector<16x128xf32> to vector<1x128xf32>
    %cst_11 = arith.constant 0.000000e+00 : f32
    %40 = vector.shape_cast %38 : vector<8x1xi1> to vector<8x1xi1>
    %41 = vector.broadcast %40 : vector<8x1xi1> to vector<8x128xi1>
    %42 = vector.shape_cast %39 : vector<1x128xf32> to vector<1x128xf32>
    %43 = vector.broadcast %42 : vector<1x128xf32> to vector<8x128xf32>
    %44 = vector.broadcast %cst_11 : f32 to vector<8x128xf32>
    %45 = arith.select %41, %43, %44 : vector<8x128xi1>, vector<8x128xf32>
    %46 = arith.addf %36, %45 : vector<8x128xf32>
    %cst_12 = arith.constant 2.000000e+00 : f32
    %47 = vector.broadcast %cst_12 : f32 to vector<8x1xf32>
    %48 = arith.cmpf oeq, %17, %47 : vector<8x1xf32>
    %49 = vector.extract_strided_slice %1 {offsets = [2, 0], sizes = [1, 128], strides = [1, 1]} : vector<16x128xf32> to vector<1x128xf32>
    %cst_13 = arith.constant 0.000000e+00 : f32
    %50 = vector.shape_cast %48 : vector<8x1xi1> to vector<8x1xi1>
    %51 = vector.broadcast %50 : vector<8x1xi1> to vector<8x128xi1>
    %52 = vector.shape_cast %49 : vector<1x128xf32> to vector<1x128xf32>
    %53 = vector.broadcast %52 : vector<1x128xf32> to vector<8x128xf32>
    %54 = vector.broadcast %cst_13 : f32 to vector<8x128xf32>
    %55 = arith.select %51, %53, %54 : vector<8x128xi1>, vector<8x128xf32>
    %56 = arith.addf %46, %55 : vector<8x128xf32>
    %cst_14 = arith.constant 3.000000e+00 : f32
    %57 = vector.broadcast %cst_14 : f32 to vector<8x1xf32>
    %58 = arith.cmpf oeq, %17, %57 : vector<8x1xf32>
    %59 = vector.extract_strided_slice %1 {offsets = [3, 0], sizes = [1, 128], strides = [1, 1]} : vector<16x128xf32> to vector<1x128xf32>
    %cst_15 = arith.constant 0.000000e+00 : f32
    %60 = vector.shape_cast %58 : vector<8x1xi1> to vector<8x1xi1>
    %61 = vector.broadcast %60 : vector<8x1xi1> to vector<8x128xi1>
    %62 = vector.shape_cast %59 : vector<1x128xf32> to vector<1x128xf32>
    %63 = vector.broadcast %62 : vector<1x128xf32> to vector<8x128xf32>
    %64 = vector.broadcast %cst_15 : f32 to vector<8x128xf32>
    %65 = arith.select %61, %63, %64 : vector<8x128xi1>, vector<8x128xf32>
    %66 = arith.addf %56, %65 : vector<8x128xf32>
    %cst_16 = arith.constant 4.000000e+00 : f32
    %67 = vector.broadcast %cst_16 : f32 to vector<8x1xf32>
    %68 = arith.cmpf oeq, %17, %67 : vector<8x1xf32>
    %69 = vector.extract_strided_slice %1 {offsets = [4, 0], sizes = [1, 128], strides = [1, 1]} : vector<16x128xf32> to vector<1x128xf32>
    %cst_17 = arith.constant 0.000000e+00 : f32
    %70 = vector.shape_cast %68 : vector<8x1xi1> to vector<8x1xi1>
    %71 = vector.broadcast %70 : vector<8x1xi1> to vector<8x128xi1>
    %72 = vector.shape_cast %69 : vector<1x128xf32> to vector<1x128xf32>
    %73 = vector.broadcast %72 : vector<1x128xf32> to vector<8x128xf32>
    %74 = vector.broadcast %cst_17 : f32 to vector<8x128xf32>
    %75 = arith.select %71, %73, %74 : vector<8x128xi1>, vector<8x128xf32>
    %76 = arith.addf %66, %75 : vector<8x128xf32>
    %cst_18 = arith.constant 5.000000e+00 : f32
    %77 = vector.broadcast %cst_18 : f32 to vector<8x1xf32>
    %78 = arith.cmpf oeq, %17, %77 : vector<8x1xf32>
    %79 = vector.extract_strided_slice %1 {offsets = [5, 0], sizes = [1, 128], strides = [1, 1]} : vector<16x128xf32> to vector<1x128xf32>
    %cst_19 = arith.constant 0.000000e+00 : f32
    %80 = vector.shape_cast %78 : vector<8x1xi1> to vector<8x1xi1>
    %81 = vector.broadcast %80 : vector<8x1xi1> to vector<8x128xi1>
    %82 = vector.shape_cast %79 : vector<1x128xf32> to vector<1x128xf32>
    %83 = vector.broadcast %82 : vector<1x128xf32> to vector<8x128xf32>
    %84 = vector.broadcast %cst_19 : f32 to vector<8x128xf32>
    %85 = arith.select %81, %83, %84 : vector<8x128xi1>, vector<8x128xf32>
    %86 = arith.addf %76, %85 : vector<8x128xf32>
    %cst_20 = arith.constant 6.000000e+00 : f32
    %87 = vector.broadcast %cst_20 : f32 to vector<8x1xf32>
    %88 = arith.cmpf oeq, %17, %87 : vector<8x1xf32>
    %89 = vector.extract_strided_slice %1 {offsets = [6, 0], sizes = [1, 128], strides = [1, 1]} : vector<16x128xf32> to vector<1x128xf32>
    %cst_21 = arith.constant 0.000000e+00 : f32
    %90 = vector.shape_cast %88 : vector<8x1xi1> to vector<8x1xi1>
    %91 = vector.broadcast %90 : vector<8x1xi1> to vector<8x128xi1>
    %92 = vector.shape_cast %89 : vector<1x128xf32> to vector<1x128xf32>
    %93 = vector.broadcast %92 : vector<1x128xf32> to vector<8x128xf32>
    %94 = vector.broadcast %cst_21 : f32 to vector<8x128xf32>
    %95 = arith.select %91, %93, %94 : vector<8x128xi1>, vector<8x128xf32>
    %96 = arith.addf %86, %95 : vector<8x128xf32>
    %cst_22 = arith.constant 7.000000e+00 : f32
    %97 = vector.broadcast %cst_22 : f32 to vector<8x1xf32>
    %98 = arith.cmpf oeq, %17, %97 : vector<8x1xf32>
    %99 = vector.extract_strided_slice %1 {offsets = [7, 0], sizes = [1, 128], strides = [1, 1]} : vector<16x128xf32> to vector<1x128xf32>
    %cst_23 = arith.constant 0.000000e+00 : f32
    %100 = vector.shape_cast %98 : vector<8x1xi1> to vector<8x1xi1>
    %101 = vector.broadcast %100 : vector<8x1xi1> to vector<8x128xi1>
    %102 = vector.shape_cast %99 : vector<1x128xf32> to vector<1x128xf32>
    %103 = vector.broadcast %102 : vector<1x128xf32> to vector<8x128xf32>
    %104 = vector.broadcast %cst_23 : f32 to vector<8x128xf32>
    %105 = arith.select %101, %103, %104 : vector<8x128xi1>, vector<8x128xf32>
    %106 = arith.addf %96, %105 : vector<8x128xf32>
    %cst_24 = arith.constant 8.000000e+00 : f32
    %107 = vector.broadcast %cst_24 : f32 to vector<8x1xf32>
    %108 = arith.cmpf oeq, %17, %107 : vector<8x1xf32>
    %109 = vector.extract_strided_slice %1 {offsets = [8, 0], sizes = [1, 128], strides = [1, 1]} : vector<16x128xf32> to vector<1x128xf32>
    %cst_25 = arith.constant 0.000000e+00 : f32
    %110 = vector.shape_cast %108 : vector<8x1xi1> to vector<8x1xi1>
    %111 = vector.broadcast %110 : vector<8x1xi1> to vector<8x128xi1>
    %112 = vector.shape_cast %109 : vector<1x128xf32> to vector<1x128xf32>
    %113 = vector.broadcast %112 : vector<1x128xf32> to vector<8x128xf32>
    %114 = vector.broadcast %cst_25 : f32 to vector<8x128xf32>
    %115 = arith.select %111, %113, %114 : vector<8x128xi1>, vector<8x128xf32>
    %116 = arith.addf %106, %115 : vector<8x128xf32>
    %cst_26 = arith.constant 9.000000e+00 : f32
    %117 = vector.broadcast %cst_26 : f32 to vector<8x1xf32>
    %118 = arith.cmpf oeq, %17, %117 : vector<8x1xf32>
    %119 = vector.extract_strided_slice %1 {offsets = [9, 0], sizes = [1, 128], strides = [1, 1]} : vector<16x128xf32> to vector<1x128xf32>
    %cst_27 = arith.constant 0.000000e+00 : f32
    %120 = vector.shape_cast %118 : vector<8x1xi1> to vector<8x1xi1>
    %121 = vector.broadcast %120 : vector<8x1xi1> to vector<8x128xi1>
    %122 = vector.shape_cast %119 : vector<1x128xf32> to vector<1x128xf32>
    %123 = vector.broadcast %122 : vector<1x128xf32> to vector<8x128xf32>
    %124 = vector.broadcast %cst_27 : f32 to vector<8x128xf32>
    %125 = arith.select %121, %123, %124 : vector<8x128xi1>, vector<8x128xf32>
    %126 = arith.addf %116, %125 : vector<8x128xf32>
    %cst_28 = arith.constant 1.000000e+01 : f32
    %127 = vector.broadcast %cst_28 : f32 to vector<8x1xf32>
    %128 = arith.cmpf oeq, %17, %127 : vector<8x1xf32>
    %129 = vector.extract_strided_slice %1 {offsets = [10, 0], sizes = [1, 128], strides = [1, 1]} : vector<16x128xf32> to vector<1x128xf32>
    %cst_29 = arith.constant 0.000000e+00 : f32
    %130 = vector.shape_cast %128 : vector<8x1xi1> to vector<8x1xi1>
    %131 = vector.broadcast %130 : vector<8x1xi1> to vector<8x128xi1>
    %132 = vector.shape_cast %129 : vector<1x128xf32> to vector<1x128xf32>
    %133 = vector.broadcast %132 : vector<1x128xf32> to vector<8x128xf32>
    %134 = vector.broadcast %cst_29 : f32 to vector<8x128xf32>
    %135 = arith.select %131, %133, %134 : vector<8x128xi1>, vector<8x128xf32>
    %136 = arith.addf %126, %135 : vector<8x128xf32>
    %cst_30 = arith.constant 1.100000e+01 : f32
    %137 = vector.broadcast %cst_30 : f32 to vector<8x1xf32>
    %138 = arith.cmpf oeq, %17, %137 : vector<8x1xf32>
    %139 = vector.extract_strided_slice %1 {offsets = [11, 0], sizes = [1, 128], strides = [1, 1]} : vector<16x128xf32> to vector<1x128xf32>
    %cst_31 = arith.constant 0.000000e+00 : f32
    %140 = vector.shape_cast %138 : vector<8x1xi1> to vector<8x1xi1>
    %141 = vector.broadcast %140 : vector<8x1xi1> to vector<8x128xi1>
    %142 = vector.shape_cast %139 : vector<1x128xf32> to vector<1x128xf32>
    %143 = vector.broadcast %142 : vector<1x128xf32> to vector<8x128xf32>
    %144 = vector.broadcast %cst_31 : f32 to vector<8x128xf32>
    %145 = arith.select %141, %143, %144 : vector<8x128xi1>, vector<8x128xf32>
    %146 = arith.addf %136, %145 : vector<8x128xf32>
    %cst_32 = arith.constant 1.200000e+01 : f32
    %147 = vector.broadcast %cst_32 : f32 to vector<8x1xf32>
    %148 = arith.cmpf oeq, %17, %147 : vector<8x1xf32>
    %149 = vector.extract_strided_slice %1 {offsets = [12, 0], sizes = [1, 128], strides = [1, 1]} : vector<16x128xf32> to vector<1x128xf32>
    %cst_33 = arith.constant 0.000000e+00 : f32
    %150 = vector.shape_cast %148 : vector<8x1xi1> to vector<8x1xi1>
    %151 = vector.broadcast %150 : vector<8x1xi1> to vector<8x128xi1>
    %152 = vector.shape_cast %149 : vector<1x128xf32> to vector<1x128xf32>
    %153 = vector.broadcast %152 : vector<1x128xf32> to vector<8x128xf32>
    %154 = vector.broadcast %cst_33 : f32 to vector<8x128xf32>
    %155 = arith.select %151, %153, %154 : vector<8x128xi1>, vector<8x128xf32>
    %156 = arith.addf %146, %155 : vector<8x128xf32>
    %cst_34 = arith.constant 1.300000e+01 : f32
    %157 = vector.broadcast %cst_34 : f32 to vector<8x1xf32>
    %158 = arith.cmpf oeq, %17, %157 : vector<8x1xf32>
    %159 = vector.extract_strided_slice %1 {offsets = [13, 0], sizes = [1, 128], strides = [1, 1]} : vector<16x128xf32> to vector<1x128xf32>
    %cst_35 = arith.constant 0.000000e+00 : f32
    %160 = vector.shape_cast %158 : vector<8x1xi1> to vector<8x1xi1>
    %161 = vector.broadcast %160 : vector<8x1xi1> to vector<8x128xi1>
    %162 = vector.shape_cast %159 : vector<1x128xf32> to vector<1x128xf32>
    %163 = vector.broadcast %162 : vector<1x128xf32> to vector<8x128xf32>
    %164 = vector.broadcast %cst_35 : f32 to vector<8x128xf32>
    %165 = arith.select %161, %163, %164 : vector<8x128xi1>, vector<8x128xf32>
    %166 = arith.addf %156, %165 : vector<8x128xf32>
    %cst_36 = arith.constant 1.400000e+01 : f32
    %167 = vector.broadcast %cst_36 : f32 to vector<8x1xf32>
    %168 = arith.cmpf oeq, %17, %167 : vector<8x1xf32>
    %169 = vector.extract_strided_slice %1 {offsets = [14, 0], sizes = [1, 128], strides = [1, 1]} : vector<16x128xf32> to vector<1x128xf32>
    %cst_37 = arith.constant 0.000000e+00 : f32
    %170 = vector.shape_cast %168 : vector<8x1xi1> to vector<8x1xi1>
    %171 = vector.broadcast %170 : vector<8x1xi1> to vector<8x128xi1>
    %172 = vector.shape_cast %169 : vector<1x128xf32> to vector<1x128xf32>
    %173 = vector.broadcast %172 : vector<1x128xf32> to vector<8x128xf32>
    %174 = vector.broadcast %cst_37 : f32 to vector<8x128xf32>
    %175 = arith.select %171, %173, %174 : vector<8x128xi1>, vector<8x128xf32>
    %176 = arith.addf %166, %175 : vector<8x128xf32>
    %cst_38 = arith.constant 1.500000e+01 : f32
    %177 = vector.broadcast %cst_38 : f32 to vector<8x1xf32>
    %178 = arith.cmpf oeq, %17, %177 : vector<8x1xf32>
    %179 = vector.extract_strided_slice %1 {offsets = [15, 0], sizes = [1, 128], strides = [1, 1]} : vector<16x128xf32> to vector<1x128xf32>
    %cst_39 = arith.constant 0.000000e+00 : f32
    %180 = vector.shape_cast %178 : vector<8x1xi1> to vector<8x1xi1>
    %181 = vector.broadcast %180 : vector<8x1xi1> to vector<8x128xi1>
    %182 = vector.shape_cast %179 : vector<1x128xf32> to vector<1x128xf32>
    %183 = vector.broadcast %182 : vector<1x128xf32> to vector<8x128xf32>
    %184 = vector.broadcast %cst_39 : f32 to vector<8x128xf32>
    %185 = arith.select %181, %183, %184 : vector<8x128xi1>, vector<8x128xf32>
    %186 = arith.addf %176, %185 : vector<8x128xf32>
    %187 = arith.subf %15, %13 : vector<8x1xf32>
    %188 = arith.subf %16, %14 : vector<8x1xf32>
    %cst_40 = arith.constant 1.000000e-07 : f32
    %189 = vector.broadcast %cst_40 : f32 to vector<8x1xf32>
    %190 = arith.addf %188, %189 : vector<8x1xf32>
    %191 = arith.subf %8, %6 : vector<1x128xf32>
    %192 = arith.subf %9, %7 : vector<1x128xf32>
    %cst_41 = arith.constant 1.000000e-07 : f32
    %193 = vector.broadcast %cst_41 : f32 to vector<1x128xf32>
    %194 = arith.addf %192, %193 : vector<1x128xf32>
    %195 = vector.broadcast %15 : vector<8x1xf32> to vector<8x128xf32>
    %196 = vector.broadcast %8 : vector<1x128xf32> to vector<8x128xf32>
    %197 = arith.minimumf %195, %196 : vector<8x128xf32>
    %198 = vector.broadcast %13 : vector<8x1xf32> to vector<8x128xf32>
    %199 = vector.broadcast %6 : vector<1x128xf32> to vector<8x128xf32>
    %200 = arith.maximumf %198, %199 : vector<8x128xf32>
    %201 = arith.subf %197, %200 : vector<8x128xf32>
    %cst_42 = arith.constant 0.000000e+00 : f32
    %202 = vector.broadcast %cst_42 : f32 to vector<8x128xf32>
    %203 = arith.maximumf %201, %202 : vector<8x128xf32>
    %204 = vector.broadcast %16 : vector<8x1xf32> to vector<8x128xf32>
    %205 = vector.broadcast %9 : vector<1x128xf32> to vector<8x128xf32>
    %206 = arith.minimumf %204, %205 : vector<8x128xf32>
    %207 = vector.broadcast %14 : vector<8x1xf32> to vector<8x128xf32>
    %208 = vector.broadcast %7 : vector<1x128xf32> to vector<8x128xf32>
    %209 = arith.maximumf %207, %208 : vector<8x128xf32>
    %210 = arith.subf %206, %209 : vector<8x128xf32>
    %cst_43 = arith.constant 0.000000e+00 : f32
    %211 = vector.broadcast %cst_43 : f32 to vector<8x128xf32>
    %212 = arith.maximumf %210, %211 : vector<8x128xf32>
    %213 = arith.mulf %203, %212 : vector<8x128xf32>
    %214 = arith.mulf %187, %190 : vector<8x1xf32>
    %215 = arith.mulf %191, %194 : vector<1x128xf32>
    %216 = vector.broadcast %214 : vector<8x1xf32> to vector<8x128xf32>
    %217 = vector.broadcast %215 : vector<1x128xf32> to vector<8x128xf32>
    %218 = arith.addf %216, %217 : vector<8x128xf32>
    %219 = arith.subf %218, %213 : vector<8x128xf32>
    %cst_44 = arith.constant 1.000000e-07 : f32
    %220 = vector.broadcast %cst_44 : f32 to vector<8x128xf32>
    %221 = arith.addf %219, %220 : vector<8x128xf32>
    %222 = arith.divf %213, %221 : vector<8x128xf32>
    %223 = vector.broadcast %15 : vector<8x1xf32> to vector<8x128xf32>
    %224 = vector.broadcast %8 : vector<1x128xf32> to vector<8x128xf32>
    %225 = arith.maximumf %223, %224 : vector<8x128xf32>
    %226 = vector.broadcast %13 : vector<8x1xf32> to vector<8x128xf32>
    %227 = vector.broadcast %6 : vector<1x128xf32> to vector<8x128xf32>
    %228 = arith.minimumf %226, %227 : vector<8x128xf32>
    %229 = arith.subf %225, %228 : vector<8x128xf32>
    %230 = vector.broadcast %16 : vector<8x1xf32> to vector<8x128xf32>
    %231 = vector.broadcast %9 : vector<1x128xf32> to vector<8x128xf32>
    %232 = arith.maximumf %230, %231 : vector<8x128xf32>
    %233 = vector.broadcast %14 : vector<8x1xf32> to vector<8x128xf32>
    %234 = vector.broadcast %7 : vector<1x128xf32> to vector<8x128xf32>
    %235 = arith.minimumf %233, %234 : vector<8x128xf32>
    %236 = arith.subf %232, %235 : vector<8x128xf32>
    %237 = arith.mulf %229, %229 : vector<8x128xf32>
    %238 = arith.mulf %236, %236 : vector<8x128xf32>
    %239 = arith.addf %237, %238 : vector<8x128xf32>
    %cst_45 = arith.constant 1.000000e-07 : f32
    %240 = vector.broadcast %cst_45 : f32 to vector<8x128xf32>
    %241 = arith.addf %239, %240 : vector<8x128xf32>
    %242 = arith.addf %6, %8 : vector<1x128xf32>
    %243 = vector.broadcast %242 : vector<1x128xf32> to vector<8x128xf32>
    %244 = vector.broadcast %13 : vector<8x1xf32> to vector<8x128xf32>
    %245 = arith.subf %243, %244 : vector<8x128xf32>
    %246 = vector.broadcast %15 : vector<8x1xf32> to vector<8x128xf32>
    %247 = arith.subf %245, %246 : vector<8x128xf32>
    %248 = arith.mulf %247, %247 : vector<8x128xf32>
    %249 = arith.addf %7, %9 : vector<1x128xf32>
    %250 = vector.broadcast %249 : vector<1x128xf32> to vector<8x128xf32>
    %251 = vector.broadcast %14 : vector<8x1xf32> to vector<8x128xf32>
    %252 = arith.subf %250, %251 : vector<8x128xf32>
    %253 = vector.broadcast %16 : vector<8x1xf32> to vector<8x128xf32>
    %254 = arith.subf %252, %253 : vector<8x128xf32>
    %255 = arith.mulf %254, %254 : vector<8x128xf32>
    %256 = arith.addf %248, %255 : vector<8x128xf32>
    %cst_46 = arith.constant 4.000000e+00 : f32
    %257 = vector.broadcast %cst_46 : f32 to vector<8x128xf32>
    %258 = arith.divf %256, %257 : vector<8x128xf32>
    %259 = vector.broadcast %10 : vector<1x128xf32> to vector<8x128xf32>
    %260 = vector.broadcast %19 : vector<8x1xf32> to vector<8x128xf32>
    %261 = arith.subf %259, %260 : vector<8x128xf32>
    %262 = arith.mulf %261, %261 : vector<8x128xf32>
    %cst_47 = arith.constant 0.405284733 : f32
    %263 = vector.broadcast %cst_47 : f32 to vector<8x128xf32>
    %264 = arith.mulf %263, %262 : vector<8x128xf32>
    %265 = arith.subf %264, %222 : vector<8x128xf32>
    %cst_48 = arith.constant 1.00000012 : f32
    %266 = vector.broadcast %cst_48 : f32 to vector<8x128xf32>
    %267 = arith.addf %265, %266 : vector<8x128xf32>
    %268 = arith.divf %264, %267 : vector<8x128xf32>
    %269 = arith.divf %258, %241 : vector<8x128xf32>
    %270 = arith.mulf %264, %268 : vector<8x128xf32>
    %271 = arith.addf %269, %270 : vector<8x128xf32>
    %272 = arith.subf %222, %271 : vector<8x128xf32>
    %cst_49 = arith.constant 0.000000e+00 : f32
    %273 = vector.broadcast %cst_49 : f32 to vector<8x128xf32>
    %274 = arith.maximumf %272, %273 : vector<8x128xf32>
    %275 = arith.mulf %274, %274 : vector<8x128xf32>
    %276 = arith.mulf %275, %275 : vector<8x128xf32>
    %277 = arith.mulf %275, %276 : vector<8x128xf32>
    %278 = arith.mulf %186, %277 : vector<8x128xf32>
    %279 = vector.broadcast %11 : vector<1x128xf32> to vector<8x128xf32>
    %280 = vector.broadcast %13 : vector<8x1xf32> to vector<8x128xf32>
    %281 = arith.subf %279, %280 : vector<8x128xf32>
    %282 = vector.broadcast %12 : vector<1x128xf32> to vector<8x128xf32>
    %283 = vector.broadcast %14 : vector<8x1xf32> to vector<8x128xf32>
    %284 = arith.subf %282, %283 : vector<8x128xf32>
    %285 = arith.minimumf %281, %284 : vector<8x128xf32>
    %286 = vector.broadcast %15 : vector<8x1xf32> to vector<8x128xf32>
    %287 = vector.broadcast %11 : vector<1x128xf32> to vector<8x128xf32>
    %288 = arith.subf %286, %287 : vector<8x128xf32>
    %289 = vector.broadcast %16 : vector<8x1xf32> to vector<8x128xf32>
    %290 = vector.broadcast %12 : vector<1x128xf32> to vector<8x128xf32>
    %291 = arith.subf %289, %290 : vector<8x128xf32>
    %292 = arith.minimumf %288, %291 : vector<8x128xf32>
    %293 = arith.minimumf %285, %292 : vector<8x128xf32>
    %cst_50 = arith.constant 9.99999971E-10 : f32
    %294 = vector.broadcast %cst_50 : f32 to vector<8x128xf32>
    %295 = arith.cmpf ogt, %293, %294 : vector<8x128xf32>
    %296 = arith.extui %295 : vector<8x128xi1> to vector<8x128xi32>
    %297 = arith.sitofp %296 : vector<8x128xi32> to vector<8x128xf32>
    %298 = arith.mulf %278, %297 : vector<8x128xf32>
    %cst_51 = arith.constant 0.000000e+00 : f32
    %299 = vector.broadcast %cst_51 : f32 to vector<8x128xf32>
    %c0_i32 = arith.constant 0 : i32
    %cst_52 = arith.constant dense<0xFF800000> : vector<8xf32>
    %300 = vector.multi_reduction <maximumf>, %298, %cst_52 [1] : vector<8x128xf32> to vector<8xf32>
    %301 = vector.shape_cast %300 : vector<8xf32> to vector<8x1xf32>
    %302 = vector.broadcast %301 : vector<8x1xf32> to vector<8x128xf32>
    %303 = arith.cmpf oeq, %298, %302 : vector<8x128xf32>
    %cst_53 = arith.constant 1.280000e+02 : f32
    %304 = vector.shape_cast %21 : vector<1x128xf32> to vector<1x128xf32>
    %305 = vector.broadcast %304 : vector<1x128xf32> to vector<8x128xf32>
    %306 = vector.broadcast %cst_53 : f32 to vector<8x128xf32>
    %307 = arith.select %303, %305, %306 : vector<8x128xi1>, vector<8x128xf32>
    %cst_54 = arith.constant dense<0x7F800000> : vector<8xf32>
    %308 = vector.multi_reduction <minimumf>, %307, %cst_54 [1] : vector<8x128xf32> to vector<8xf32>
    %309 = vector.shape_cast %308 : vector<8xf32> to vector<8x1xf32>
    %310 = vector.broadcast %21 : vector<1x128xf32> to vector<8x128xf32>
    %311 = vector.broadcast %309 : vector<8x1xf32> to vector<8x128xf32>
    %312 = arith.cmpf oeq, %310, %311 : vector<8x128xf32>
    %313 = arith.extui %312 : vector<8x128xi1> to vector<8x128xi32>
    %314 = arith.sitofp %313 : vector<8x128xi32> to vector<8x128xf32>
    %315 = arith.addf %299, %314 : vector<8x128xf32>
    %cst_55 = arith.constant -1.000000e+30 : f32
    %316 = vector.broadcast %cst_55 : f32 to vector<8x128xf32>
    %317 = arith.select %312, %316, %298 : vector<8x128xi1>, vector<8x128xf32>
    %c1_i32 = arith.constant 1 : i32
    %cst_56 = arith.constant dense<0xFF800000> : vector<8xf32>
    %318 = vector.multi_reduction <maximumf>, %317, %cst_56 [1] : vector<8x128xf32> to vector<8xf32>
    %319 = vector.shape_cast %318 : vector<8xf32> to vector<8x1xf32>
    %320 = vector.broadcast %319 : vector<8x1xf32> to vector<8x128xf32>
    %321 = arith.cmpf oeq, %317, %320 : vector<8x128xf32>
    %cst_57 = arith.constant 1.280000e+02 : f32
    %322 = vector.shape_cast %21 : vector<1x128xf32> to vector<1x128xf32>
    %323 = vector.broadcast %322 : vector<1x128xf32> to vector<8x128xf32>
    %324 = vector.broadcast %cst_57 : f32 to vector<8x128xf32>
    %325 = arith.select %321, %323, %324 : vector<8x128xi1>, vector<8x128xf32>
    %cst_58 = arith.constant dense<0x7F800000> : vector<8xf32>
    %326 = vector.multi_reduction <minimumf>, %325, %cst_58 [1] : vector<8x128xf32> to vector<8xf32>
    %327 = vector.shape_cast %326 : vector<8xf32> to vector<8x1xf32>
    %328 = vector.broadcast %21 : vector<1x128xf32> to vector<8x128xf32>
    %329 = vector.broadcast %327 : vector<8x1xf32> to vector<8x128xf32>
    %330 = arith.cmpf oeq, %328, %329 : vector<8x128xf32>
    %331 = arith.extui %330 : vector<8x128xi1> to vector<8x128xi32>
    %332 = arith.sitofp %331 : vector<8x128xi32> to vector<8x128xf32>
    %333 = arith.addf %315, %332 : vector<8x128xf32>
    %cst_59 = arith.constant -1.000000e+30 : f32
    %334 = vector.broadcast %cst_59 : f32 to vector<8x128xf32>
    %335 = arith.select %330, %334, %317 : vector<8x128xi1>, vector<8x128xf32>
    %c2_i32 = arith.constant 2 : i32
    %cst_60 = arith.constant dense<0xFF800000> : vector<8xf32>
    %336 = vector.multi_reduction <maximumf>, %335, %cst_60 [1] : vector<8x128xf32> to vector<8xf32>
    %337 = vector.shape_cast %336 : vector<8xf32> to vector<8x1xf32>
    %338 = vector.broadcast %337 : vector<8x1xf32> to vector<8x128xf32>
    %339 = arith.cmpf oeq, %335, %338 : vector<8x128xf32>
    %cst_61 = arith.constant 1.280000e+02 : f32
    %340 = vector.shape_cast %21 : vector<1x128xf32> to vector<1x128xf32>
    %341 = vector.broadcast %340 : vector<1x128xf32> to vector<8x128xf32>
    %342 = vector.broadcast %cst_61 : f32 to vector<8x128xf32>
    %343 = arith.select %339, %341, %342 : vector<8x128xi1>, vector<8x128xf32>
    %cst_62 = arith.constant dense<0x7F800000> : vector<8xf32>
    %344 = vector.multi_reduction <minimumf>, %343, %cst_62 [1] : vector<8x128xf32> to vector<8xf32>
    %345 = vector.shape_cast %344 : vector<8xf32> to vector<8x1xf32>
    %346 = vector.broadcast %21 : vector<1x128xf32> to vector<8x128xf32>
    %347 = vector.broadcast %345 : vector<8x1xf32> to vector<8x128xf32>
    %348 = arith.cmpf oeq, %346, %347 : vector<8x128xf32>
    %349 = arith.extui %348 : vector<8x128xi1> to vector<8x128xi32>
    %350 = arith.sitofp %349 : vector<8x128xi32> to vector<8x128xf32>
    %351 = arith.addf %333, %350 : vector<8x128xf32>
    %cst_63 = arith.constant -1.000000e+30 : f32
    %352 = vector.broadcast %cst_63 : f32 to vector<8x128xf32>
    %353 = arith.select %348, %352, %335 : vector<8x128xi1>, vector<8x128xf32>
    %c3_i32 = arith.constant 3 : i32
    %cst_64 = arith.constant dense<0xFF800000> : vector<8xf32>
    %354 = vector.multi_reduction <maximumf>, %353, %cst_64 [1] : vector<8x128xf32> to vector<8xf32>
    %355 = vector.shape_cast %354 : vector<8xf32> to vector<8x1xf32>
    %356 = vector.broadcast %355 : vector<8x1xf32> to vector<8x128xf32>
    %357 = arith.cmpf oeq, %353, %356 : vector<8x128xf32>
    %cst_65 = arith.constant 1.280000e+02 : f32
    %358 = vector.shape_cast %21 : vector<1x128xf32> to vector<1x128xf32>
    %359 = vector.broadcast %358 : vector<1x128xf32> to vector<8x128xf32>
    %360 = vector.broadcast %cst_65 : f32 to vector<8x128xf32>
    %361 = arith.select %357, %359, %360 : vector<8x128xi1>, vector<8x128xf32>
    %cst_66 = arith.constant dense<0x7F800000> : vector<8xf32>
    %362 = vector.multi_reduction <minimumf>, %361, %cst_66 [1] : vector<8x128xf32> to vector<8xf32>
    %363 = vector.shape_cast %362 : vector<8xf32> to vector<8x1xf32>
    %364 = vector.broadcast %21 : vector<1x128xf32> to vector<8x128xf32>
    %365 = vector.broadcast %363 : vector<8x1xf32> to vector<8x128xf32>
    %366 = arith.cmpf oeq, %364, %365 : vector<8x128xf32>
    %367 = arith.extui %366 : vector<8x128xi1> to vector<8x128xi32>
    %368 = arith.sitofp %367 : vector<8x128xi32> to vector<8x128xf32>
    %369 = arith.addf %351, %368 : vector<8x128xf32>
    %cst_67 = arith.constant -1.000000e+30 : f32
    %370 = vector.broadcast %cst_67 : f32 to vector<8x128xf32>
    %371 = arith.select %366, %370, %353 : vector<8x128xi1>, vector<8x128xf32>
    %c4_i32 = arith.constant 4 : i32
    %cst_68 = arith.constant dense<0xFF800000> : vector<8xf32>
    %372 = vector.multi_reduction <maximumf>, %371, %cst_68 [1] : vector<8x128xf32> to vector<8xf32>
    %373 = vector.shape_cast %372 : vector<8xf32> to vector<8x1xf32>
    %374 = vector.broadcast %373 : vector<8x1xf32> to vector<8x128xf32>
    %375 = arith.cmpf oeq, %371, %374 : vector<8x128xf32>
    %cst_69 = arith.constant 1.280000e+02 : f32
    %376 = vector.shape_cast %21 : vector<1x128xf32> to vector<1x128xf32>
    %377 = vector.broadcast %376 : vector<1x128xf32> to vector<8x128xf32>
    %378 = vector.broadcast %cst_69 : f32 to vector<8x128xf32>
    %379 = arith.select %375, %377, %378 : vector<8x128xi1>, vector<8x128xf32>
    %cst_70 = arith.constant dense<0x7F800000> : vector<8xf32>
    %380 = vector.multi_reduction <minimumf>, %379, %cst_70 [1] : vector<8x128xf32> to vector<8xf32>
    %381 = vector.shape_cast %380 : vector<8xf32> to vector<8x1xf32>
    %382 = vector.broadcast %21 : vector<1x128xf32> to vector<8x128xf32>
    %383 = vector.broadcast %381 : vector<8x1xf32> to vector<8x128xf32>
    %384 = arith.cmpf oeq, %382, %383 : vector<8x128xf32>
    %385 = arith.extui %384 : vector<8x128xi1> to vector<8x128xi32>
    %386 = arith.sitofp %385 : vector<8x128xi32> to vector<8x128xf32>
    %387 = arith.addf %369, %386 : vector<8x128xf32>
    %cst_71 = arith.constant -1.000000e+30 : f32
    %388 = vector.broadcast %cst_71 : f32 to vector<8x128xf32>
    %389 = arith.select %384, %388, %371 : vector<8x128xi1>, vector<8x128xf32>
    %c5_i32 = arith.constant 5 : i32
    %cst_72 = arith.constant dense<0xFF800000> : vector<8xf32>
    %390 = vector.multi_reduction <maximumf>, %389, %cst_72 [1] : vector<8x128xf32> to vector<8xf32>
    %391 = vector.shape_cast %390 : vector<8xf32> to vector<8x1xf32>
    %392 = vector.broadcast %391 : vector<8x1xf32> to vector<8x128xf32>
    %393 = arith.cmpf oeq, %389, %392 : vector<8x128xf32>
    %cst_73 = arith.constant 1.280000e+02 : f32
    %394 = vector.shape_cast %21 : vector<1x128xf32> to vector<1x128xf32>
    %395 = vector.broadcast %394 : vector<1x128xf32> to vector<8x128xf32>
    %396 = vector.broadcast %cst_73 : f32 to vector<8x128xf32>
    %397 = arith.select %393, %395, %396 : vector<8x128xi1>, vector<8x128xf32>
    %cst_74 = arith.constant dense<0x7F800000> : vector<8xf32>
    %398 = vector.multi_reduction <minimumf>, %397, %cst_74 [1] : vector<8x128xf32> to vector<8xf32>
    %399 = vector.shape_cast %398 : vector<8xf32> to vector<8x1xf32>
    %400 = vector.broadcast %21 : vector<1x128xf32> to vector<8x128xf32>
    %401 = vector.broadcast %399 : vector<8x1xf32> to vector<8x128xf32>
    %402 = arith.cmpf oeq, %400, %401 : vector<8x128xf32>
    %403 = arith.extui %402 : vector<8x128xi1> to vector<8x128xi32>
    %404 = arith.sitofp %403 : vector<8x128xi32> to vector<8x128xf32>
    %405 = arith.addf %387, %404 : vector<8x128xf32>
    %cst_75 = arith.constant -1.000000e+30 : f32
    %406 = vector.broadcast %cst_75 : f32 to vector<8x128xf32>
    %407 = arith.select %402, %406, %389 : vector<8x128xi1>, vector<8x128xf32>
    %c6_i32 = arith.constant 6 : i32
    %cst_76 = arith.constant dense<0xFF800000> : vector<8xf32>
    %408 = vector.multi_reduction <maximumf>, %407, %cst_76 [1] : vector<8x128xf32> to vector<8xf32>
    %409 = vector.shape_cast %408 : vector<8xf32> to vector<8x1xf32>
    %410 = vector.broadcast %409 : vector<8x1xf32> to vector<8x128xf32>
    %411 = arith.cmpf oeq, %407, %410 : vector<8x128xf32>
    %cst_77 = arith.constant 1.280000e+02 : f32
    %412 = vector.shape_cast %21 : vector<1x128xf32> to vector<1x128xf32>
    %413 = vector.broadcast %412 : vector<1x128xf32> to vector<8x128xf32>
    %414 = vector.broadcast %cst_77 : f32 to vector<8x128xf32>
    %415 = arith.select %411, %413, %414 : vector<8x128xi1>, vector<8x128xf32>
    %cst_78 = arith.constant dense<0x7F800000> : vector<8xf32>
    %416 = vector.multi_reduction <minimumf>, %415, %cst_78 [1] : vector<8x128xf32> to vector<8xf32>
    %417 = vector.shape_cast %416 : vector<8xf32> to vector<8x1xf32>
    %418 = vector.broadcast %21 : vector<1x128xf32> to vector<8x128xf32>
    %419 = vector.broadcast %417 : vector<8x1xf32> to vector<8x128xf32>
    %420 = arith.cmpf oeq, %418, %419 : vector<8x128xf32>
    %421 = arith.extui %420 : vector<8x128xi1> to vector<8x128xi32>
    %422 = arith.sitofp %421 : vector<8x128xi32> to vector<8x128xf32>
    %423 = arith.addf %405, %422 : vector<8x128xf32>
    %cst_79 = arith.constant -1.000000e+30 : f32
    %424 = vector.broadcast %cst_79 : f32 to vector<8x128xf32>
    %425 = arith.select %420, %424, %407 : vector<8x128xi1>, vector<8x128xf32>
    %c7_i32 = arith.constant 7 : i32
    %cst_80 = arith.constant dense<0xFF800000> : vector<8xf32>
    %426 = vector.multi_reduction <maximumf>, %425, %cst_80 [1] : vector<8x128xf32> to vector<8xf32>
    %427 = vector.shape_cast %426 : vector<8xf32> to vector<8x1xf32>
    %428 = vector.broadcast %427 : vector<8x1xf32> to vector<8x128xf32>
    %429 = arith.cmpf oeq, %425, %428 : vector<8x128xf32>
    %cst_81 = arith.constant 1.280000e+02 : f32
    %430 = vector.shape_cast %21 : vector<1x128xf32> to vector<1x128xf32>
    %431 = vector.broadcast %430 : vector<1x128xf32> to vector<8x128xf32>
    %432 = vector.broadcast %cst_81 : f32 to vector<8x128xf32>
    %433 = arith.select %429, %431, %432 : vector<8x128xi1>, vector<8x128xf32>
    %cst_82 = arith.constant dense<0x7F800000> : vector<8xf32>
    %434 = vector.multi_reduction <minimumf>, %433, %cst_82 [1] : vector<8x128xf32> to vector<8xf32>
    %435 = vector.shape_cast %434 : vector<8xf32> to vector<8x1xf32>
    %436 = vector.broadcast %21 : vector<1x128xf32> to vector<8x128xf32>
    %437 = vector.broadcast %435 : vector<8x1xf32> to vector<8x128xf32>
    %438 = arith.cmpf oeq, %436, %437 : vector<8x128xf32>
    %439 = arith.extui %438 : vector<8x128xi1> to vector<8x128xi32>
    %440 = arith.sitofp %439 : vector<8x128xi32> to vector<8x128xf32>
    %441 = arith.addf %423, %440 : vector<8x128xf32>
    %cst_83 = arith.constant -1.000000e+30 : f32
    %442 = vector.broadcast %cst_83 : f32 to vector<8x128xf32>
    %443 = arith.select %438, %442, %425 : vector<8x128xi1>, vector<8x128xf32>
    %c8_i32 = arith.constant 8 : i32
    %cst_84 = arith.constant dense<0xFF800000> : vector<8xf32>
    %444 = vector.multi_reduction <maximumf>, %443, %cst_84 [1] : vector<8x128xf32> to vector<8xf32>
    %445 = vector.shape_cast %444 : vector<8xf32> to vector<8x1xf32>
    %446 = vector.broadcast %445 : vector<8x1xf32> to vector<8x128xf32>
    %447 = arith.cmpf oeq, %443, %446 : vector<8x128xf32>
    %cst_85 = arith.constant 1.280000e+02 : f32
    %448 = vector.shape_cast %21 : vector<1x128xf32> to vector<1x128xf32>
    %449 = vector.broadcast %448 : vector<1x128xf32> to vector<8x128xf32>
    %450 = vector.broadcast %cst_85 : f32 to vector<8x128xf32>
    %451 = arith.select %447, %449, %450 : vector<8x128xi1>, vector<8x128xf32>
    %cst_86 = arith.constant dense<0x7F800000> : vector<8xf32>
    %452 = vector.multi_reduction <minimumf>, %451, %cst_86 [1] : vector<8x128xf32> to vector<8xf32>
    %453 = vector.shape_cast %452 : vector<8xf32> to vector<8x1xf32>
    %454 = vector.broadcast %21 : vector<1x128xf32> to vector<8x128xf32>
    %455 = vector.broadcast %453 : vector<8x1xf32> to vector<8x128xf32>
    %456 = arith.cmpf oeq, %454, %455 : vector<8x128xf32>
    %457 = arith.extui %456 : vector<8x128xi1> to vector<8x128xi32>
    %458 = arith.sitofp %457 : vector<8x128xi32> to vector<8x128xf32>
    %459 = arith.addf %441, %458 : vector<8x128xf32>
    %cst_87 = arith.constant -1.000000e+30 : f32
    %460 = vector.broadcast %cst_87 : f32 to vector<8x128xf32>
    %461 = arith.select %456, %460, %443 : vector<8x128xi1>, vector<8x128xf32>
    %c9_i32 = arith.constant 9 : i32
    %cst_88 = arith.constant dense<0xFF800000> : vector<8xf32>
    %462 = vector.multi_reduction <maximumf>, %461, %cst_88 [1] : vector<8x128xf32> to vector<8xf32>
    %463 = vector.shape_cast %462 : vector<8xf32> to vector<8x1xf32>
    %464 = vector.broadcast %463 : vector<8x1xf32> to vector<8x128xf32>
    %465 = arith.cmpf oeq, %461, %464 : vector<8x128xf32>
    %cst_89 = arith.constant 1.280000e+02 : f32
    %466 = vector.shape_cast %21 : vector<1x128xf32> to vector<1x128xf32>
    %467 = vector.broadcast %466 : vector<1x128xf32> to vector<8x128xf32>
    %468 = vector.broadcast %cst_89 : f32 to vector<8x128xf32>
    %469 = arith.select %465, %467, %468 : vector<8x128xi1>, vector<8x128xf32>
    %cst_90 = arith.constant dense<0x7F800000> : vector<8xf32>
    %470 = vector.multi_reduction <minimumf>, %469, %cst_90 [1] : vector<8x128xf32> to vector<8xf32>
    %471 = vector.shape_cast %470 : vector<8xf32> to vector<8x1xf32>
    %472 = vector.broadcast %21 : vector<1x128xf32> to vector<8x128xf32>
    %473 = vector.broadcast %471 : vector<8x1xf32> to vector<8x128xf32>
    %474 = arith.cmpf oeq, %472, %473 : vector<8x128xf32>
    %475 = arith.extui %474 : vector<8x128xi1> to vector<8x128xi32>
    %476 = arith.sitofp %475 : vector<8x128xi32> to vector<8x128xf32>
    %477 = arith.addf %459, %476 : vector<8x128xf32>
    %cst_91 = arith.constant -1.000000e+30 : f32
    %478 = vector.broadcast %cst_91 : f32 to vector<8x128xf32>
    %479 = arith.select %474, %478, %461 : vector<8x128xi1>, vector<8x128xf32>
    %c10_i32 = arith.constant 10 : i32
    %cst_92 = arith.constant dense<0xFF800000> : vector<8xf32>
    %480 = vector.multi_reduction <maximumf>, %479, %cst_92 [1] : vector<8x128xf32> to vector<8xf32>
    %481 = vector.shape_cast %480 : vector<8xf32> to vector<8x1xf32>
    %482 = vector.broadcast %481 : vector<8x1xf32> to vector<8x128xf32>
    %483 = arith.cmpf oeq, %479, %482 : vector<8x128xf32>
    %cst_93 = arith.constant 1.280000e+02 : f32
    %484 = vector.shape_cast %21 : vector<1x128xf32> to vector<1x128xf32>
    %485 = vector.broadcast %484 : vector<1x128xf32> to vector<8x128xf32>
    %486 = vector.broadcast %cst_93 : f32 to vector<8x128xf32>
    %487 = arith.select %483, %485, %486 : vector<8x128xi1>, vector<8x128xf32>
    %cst_94 = arith.constant dense<0x7F800000> : vector<8xf32>
    %488 = vector.multi_reduction <minimumf>, %487, %cst_94 [1] : vector<8x128xf32> to vector<8xf32>
    %489 = vector.shape_cast %488 : vector<8xf32> to vector<8x1xf32>
    %490 = vector.broadcast %21 : vector<1x128xf32> to vector<8x128xf32>
    %491 = vector.broadcast %489 : vector<8x1xf32> to vector<8x128xf32>
    %492 = arith.cmpf oeq, %490, %491 : vector<8x128xf32>
    %493 = arith.extui %492 : vector<8x128xi1> to vector<8x128xi32>
    %494 = arith.sitofp %493 : vector<8x128xi32> to vector<8x128xf32>
    %495 = arith.addf %477, %494 : vector<8x128xf32>
    %cst_95 = arith.constant -1.000000e+30 : f32
    %496 = vector.broadcast %cst_95 : f32 to vector<8x128xf32>
    %497 = arith.select %492, %496, %479 : vector<8x128xi1>, vector<8x128xf32>
    %c11_i32 = arith.constant 11 : i32
    %cst_96 = arith.constant dense<0xFF800000> : vector<8xf32>
    %498 = vector.multi_reduction <maximumf>, %497, %cst_96 [1] : vector<8x128xf32> to vector<8xf32>
    %499 = vector.shape_cast %498 : vector<8xf32> to vector<8x1xf32>
    %500 = vector.broadcast %499 : vector<8x1xf32> to vector<8x128xf32>
    %501 = arith.cmpf oeq, %497, %500 : vector<8x128xf32>
    %cst_97 = arith.constant 1.280000e+02 : f32
    %502 = vector.shape_cast %21 : vector<1x128xf32> to vector<1x128xf32>
    %503 = vector.broadcast %502 : vector<1x128xf32> to vector<8x128xf32>
    %504 = vector.broadcast %cst_97 : f32 to vector<8x128xf32>
    %505 = arith.select %501, %503, %504 : vector<8x128xi1>, vector<8x128xf32>
    %cst_98 = arith.constant dense<0x7F800000> : vector<8xf32>
    %506 = vector.multi_reduction <minimumf>, %505, %cst_98 [1] : vector<8x128xf32> to vector<8xf32>
    %507 = vector.shape_cast %506 : vector<8xf32> to vector<8x1xf32>
    %508 = vector.broadcast %21 : vector<1x128xf32> to vector<8x128xf32>
    %509 = vector.broadcast %507 : vector<8x1xf32> to vector<8x128xf32>
    %510 = arith.cmpf oeq, %508, %509 : vector<8x128xf32>
    %511 = arith.extui %510 : vector<8x128xi1> to vector<8x128xi32>
    %512 = arith.sitofp %511 : vector<8x128xi32> to vector<8x128xf32>
    %513 = arith.addf %495, %512 : vector<8x128xf32>
    %cst_99 = arith.constant -1.000000e+30 : f32
    %514 = vector.broadcast %cst_99 : f32 to vector<8x128xf32>
    %515 = arith.select %510, %514, %497 : vector<8x128xi1>, vector<8x128xf32>
    %c12_i32 = arith.constant 12 : i32
    %cst_100 = arith.constant dense<0xFF800000> : vector<8xf32>
    %516 = vector.multi_reduction <maximumf>, %515, %cst_100 [1] : vector<8x128xf32> to vector<8xf32>
    %517 = vector.shape_cast %516 : vector<8xf32> to vector<8x1xf32>
    %518 = vector.broadcast %517 : vector<8x1xf32> to vector<8x128xf32>
    %519 = arith.cmpf oeq, %515, %518 : vector<8x128xf32>
    %cst_101 = arith.constant 1.280000e+02 : f32
    %520 = vector.shape_cast %21 : vector<1x128xf32> to vector<1x128xf32>
    %521 = vector.broadcast %520 : vector<1x128xf32> to vector<8x128xf32>
    %522 = vector.broadcast %cst_101 : f32 to vector<8x128xf32>
    %523 = arith.select %519, %521, %522 : vector<8x128xi1>, vector<8x128xf32>
    %cst_102 = arith.constant dense<0x7F800000> : vector<8xf32>
    %524 = vector.multi_reduction <minimumf>, %523, %cst_102 [1] : vector<8x128xf32> to vector<8xf32>
    %525 = vector.shape_cast %524 : vector<8xf32> to vector<8x1xf32>
    %526 = vector.broadcast %21 : vector<1x128xf32> to vector<8x128xf32>
    %527 = vector.broadcast %525 : vector<8x1xf32> to vector<8x128xf32>
    %528 = arith.cmpf oeq, %526, %527 : vector<8x128xf32>
    %529 = arith.extui %528 : vector<8x128xi1> to vector<8x128xi32>
    %530 = arith.sitofp %529 : vector<8x128xi32> to vector<8x128xf32>
    %531 = arith.addf %513, %530 : vector<8x128xf32>
    %cst_103 = arith.constant -1.000000e+30 : f32
    %532 = vector.broadcast %cst_103 : f32 to vector<8x128xf32>
    %533 = arith.select %528, %532, %515 : vector<8x128xi1>, vector<8x128xf32>
    %cst_104 = arith.constant 1.000000e+00 : f32
    %534 = vector.broadcast %cst_104 : f32 to vector<8x128xf32>
    %535 = arith.cmpf ogt, %531, %534 : vector<8x128xf32>
    %cst_105 = arith.constant 0.000000e+00 : f32
    %536 = vector.broadcast %cst_105 : f32 to vector<8x128xf32>
    %537 = arith.select %535, %536, %531 : vector<8x128xi1>, vector<8x128xf32>
    %538 = arith.mulf %537, %297 : vector<8x128xf32>
    %539 = vector.broadcast %18 : vector<8x1xf32> to vector<8x128xf32>
    %540 = arith.mulf %538, %539 : vector<8x128xf32>
    %cst_106 = arith.constant dense<0.000000e+00> : vector<128xf32>
    %541 = vector.multi_reduction <add>, %540, %cst_106 [0] : vector<8x128xf32> to vector<128xf32>
    %542 = vector.shape_cast %541 : vector<128xf32> to vector<1x128xf32>
    %cst_107 = arith.constant dense<0xFF800000> : vector<128xf32>
    %543 = vector.multi_reduction <maximumf>, %274, %cst_107 [0] : vector<8x128xf32> to vector<128xf32>
    %544 = vector.shape_cast %543 : vector<128xf32> to vector<1x128xf32>
    %545 = vector.broadcast %544 : vector<1x128xf32> to vector<8x128xf32>
    %546 = arith.cmpf oeq, %274, %545 : vector<8x128xf32>
    %cst_108 = arith.constant 8.000000e+00 : f32
    %547 = vector.shape_cast %23 : vector<8x1xf32> to vector<8x1xf32>
    %548 = vector.broadcast %547 : vector<8x1xf32> to vector<8x128xf32>
    %549 = vector.broadcast %cst_108 : f32 to vector<8x128xf32>
    %550 = arith.select %546, %548, %549 : vector<8x128xi1>, vector<8x128xf32>
    %cst_109 = arith.constant dense<0x7F800000> : vector<128xf32>
    %551 = vector.multi_reduction <minimumf>, %550, %cst_109 [0] : vector<8x128xf32> to vector<128xf32>
    %552 = vector.shape_cast %551 : vector<128xf32> to vector<1x128xf32>
    %553 = vector.broadcast %23 : vector<8x1xf32> to vector<8x128xf32>
    %554 = vector.broadcast %552 : vector<1x128xf32> to vector<8x128xf32>
    %555 = arith.cmpf oeq, %553, %554 : vector<8x128xf32>
    %556 = arith.extui %555 : vector<8x128xi1> to vector<8x128xi32>
    %557 = arith.sitofp %556 : vector<8x128xi32> to vector<8x128xf32>
    %cst_110 = arith.constant 1.000000e+00 : f32
    %558 = vector.broadcast %cst_110 : f32 to vector<1x128xf32>
    %559 = arith.cmpf ogt, %542, %558 : vector<1x128xf32>
    %560 = vector.shape_cast %559 : vector<1x128xi1> to vector<1x128xi1>
    %561 = vector.broadcast %560 : vector<1x128xi1> to vector<8x128xi1>
    %562 = arith.select %561, %557, %540 : vector<8x128xi1>, vector<8x128xf32>
    %cst_111 = arith.constant dense<0.000000e+00> : vector<128xf32>
    %563 = vector.multi_reduction <add>, %562, %cst_111 [0] : vector<8x128xf32> to vector<128xf32>
    %564 = vector.shape_cast %563 : vector<128xf32> to vector<1x128xf32>
    %cst_112 = arith.constant dense<0xFF800000> : vector<128xf32>
    %565 = vector.multi_reduction <maximumf>, %562, %cst_112 [0] : vector<8x128xf32> to vector<128xf32>
    %566 = vector.shape_cast %565 : vector<128xf32> to vector<1x128xf32>
    %567 = vector.broadcast %566 : vector<1x128xf32> to vector<8x128xf32>
    %568 = arith.cmpf oeq, %562, %567 : vector<8x128xf32>
    %cst_113 = arith.constant 8.000000e+00 : f32
    %569 = vector.shape_cast %23 : vector<8x1xf32> to vector<8x1xf32>
    %570 = vector.broadcast %569 : vector<8x1xf32> to vector<8x128xf32>
    %571 = vector.broadcast %cst_113 : f32 to vector<8x128xf32>
    %572 = arith.select %568, %570, %571 : vector<8x128xi1>, vector<8x128xf32>
    %cst_114 = arith.constant dense<0x7F800000> : vector<128xf32>
    %573 = vector.multi_reduction <minimumf>, %572, %cst_114 [0] : vector<8x128xf32> to vector<128xf32>
    %574 = vector.shape_cast %573 : vector<128xf32> to vector<1x128xf32>
    %575 = vector.broadcast %23 : vector<8x1xf32> to vector<8x128xf32>
    %576 = vector.broadcast %574 : vector<1x128xf32> to vector<8x128xf32>
    %577 = arith.cmpf oeq, %575, %576 : vector<8x128xf32>
    %578 = arith.extui %577 : vector<8x128xi1> to vector<8x128xi32>
    %579 = arith.sitofp %578 : vector<8x128xi32> to vector<8x128xf32>
    %580 = vector.extract_strided_slice %5 {offsets = [0, 0], sizes = [8, 1], strides = [1, 1]} : vector<8x8xf32> to vector<8x1xf32>
    %581 = vector.broadcast %580 : vector<8x1xf32> to vector<8x128xf32>
    %582 = arith.mulf %579, %581 : vector<8x128xf32>
    %cst_115 = arith.constant dense<0.000000e+00> : vector<128xf32>
    %583 = vector.multi_reduction <add>, %582, %cst_115 [0] : vector<8x128xf32> to vector<128xf32>
    %584 = vector.shape_cast %583 : vector<128xf32> to vector<1x128xf32>
    %585 = vector.extract_strided_slice %5 {offsets = [0, 1], sizes = [8, 1], strides = [1, 1]} : vector<8x8xf32> to vector<8x1xf32>
    %586 = vector.broadcast %585 : vector<8x1xf32> to vector<8x128xf32>
    %587 = arith.mulf %579, %586 : vector<8x128xf32>
    %cst_116 = arith.constant dense<0.000000e+00> : vector<128xf32>
    %588 = vector.multi_reduction <add>, %587, %cst_116 [0] : vector<8x128xf32> to vector<128xf32>
    %589 = vector.shape_cast %588 : vector<128xf32> to vector<1x128xf32>
    %590 = vector.extract_strided_slice %5 {offsets = [0, 2], sizes = [8, 1], strides = [1, 1]} : vector<8x8xf32> to vector<8x1xf32>
    %591 = vector.broadcast %590 : vector<8x1xf32> to vector<8x128xf32>
    %592 = arith.mulf %579, %591 : vector<8x128xf32>
    %cst_117 = arith.constant dense<0.000000e+00> : vector<128xf32>
    %593 = vector.multi_reduction <add>, %592, %cst_117 [0] : vector<8x128xf32> to vector<128xf32>
    %594 = vector.shape_cast %593 : vector<128xf32> to vector<1x128xf32>
    %595 = vector.extract_strided_slice %5 {offsets = [0, 3], sizes = [8, 1], strides = [1, 1]} : vector<8x8xf32> to vector<8x1xf32>
    %596 = vector.broadcast %595 : vector<8x1xf32> to vector<8x128xf32>
    %597 = arith.mulf %579, %596 : vector<8x128xf32>
    %cst_118 = arith.constant dense<0.000000e+00> : vector<128xf32>
    %598 = vector.multi_reduction <add>, %597, %cst_118 [0] : vector<8x128xf32> to vector<128xf32>
    %599 = vector.shape_cast %598 : vector<128xf32> to vector<1x128xf32>
    %600 = vector.extract_strided_slice %5 {offsets = [0, 4], sizes = [8, 1], strides = [1, 1]} : vector<8x8xf32> to vector<8x1xf32>
    %601 = vector.broadcast %600 : vector<8x1xf32> to vector<8x128xf32>
    %602 = arith.mulf %579, %601 : vector<8x128xf32>
    %cst_119 = arith.constant dense<0.000000e+00> : vector<128xf32>
    %603 = vector.multi_reduction <add>, %602, %cst_119 [0] : vector<8x128xf32> to vector<128xf32>
    %604 = vector.shape_cast %603 : vector<128xf32> to vector<1x128xf32>
    %cst_120 = arith.constant 0.000000e+00 : f32
    %605 = vector.broadcast %cst_120 : f32 to vector<1x128xf32>
    %606 = arith.maximumf %604, %605 : vector<1x128xf32>
    %607 = arith.mulf %278, %562 : vector<8x128xf32>
    %608 = arith.mulf %274, %562 : vector<8x128xf32>
    %cst_121 = arith.constant dense<0xFF800000> : vector<8xf32>
    %609 = vector.multi_reduction <maximumf>, %607, %cst_121 [1] : vector<8x128xf32> to vector<8xf32>
    %610 = vector.shape_cast %609 : vector<8xf32> to vector<8x1xf32>
    %cst_122 = arith.constant dense<0xFF800000> : vector<8xf32>
    %611 = vector.multi_reduction <maximumf>, %608, %cst_122 [1] : vector<8x128xf32> to vector<8xf32>
    %612 = vector.shape_cast %611 : vector<8xf32> to vector<8x1xf32>
    %cst_123 = arith.constant 9.99999971E-10 : f32
    %613 = vector.broadcast %cst_123 : f32 to vector<8x1xf32>
    %614 = arith.addf %610, %613 : vector<8x1xf32>
    %615 = arith.divf %612, %614 : vector<8x1xf32>
    %616 = vector.broadcast %615 : vector<8x1xf32> to vector<8x128xf32>
    %617 = arith.mulf %607, %616 : vector<8x128xf32>
    %cst_124 = arith.constant dense<0xFF800000> : vector<128xf32>
    %618 = vector.multi_reduction <maximumf>, %617, %cst_124 [0] : vector<8x128xf32> to vector<128xf32>
    %619 = vector.shape_cast %618 : vector<128xf32> to vector<1x128xf32>
    %cst_125 = arith.constant 0.000000e+00 : f32
    %620 = vector.broadcast %cst_125 : f32 to vector<1x128xf32>
    %621 = arith.cmpf ogt, %564, %620 : vector<1x128xf32>
    %cst_126 = arith.constant 0.000000e+00 : f32
    %622 = vector.broadcast %cst_126 : f32 to vector<1x128xf32>
    %623 = arith.select %621, %619, %622 : vector<1x128xi1>, vector<1x128xf32>
    %624 = vector.broadcast %25 : vector<16x1xf32> to vector<16x128xf32>
    %625 = vector.broadcast %606 : vector<1x128xf32> to vector<16x128xf32>
    %626 = arith.cmpf oeq, %624, %625 : vector<16x128xf32>
    %cst_127 = arith.constant 0.000000e+00 : f32
    %627 = vector.shape_cast %623 : vector<1x128xf32> to vector<1x128xf32>
    %628 = vector.broadcast %627 : vector<1x128xf32> to vector<16x128xf32>
    %629 = vector.broadcast %cst_127 : f32 to vector<16x128xf32>
    %630 = arith.select %626, %628, %629 : vector<16x128xi1>, vector<16x128xf32>
    %c0_128 = arith.constant 0 : index
    %c0_129 = arith.constant 0 : index
    %c0_130 = arith.constant 0 : index
    %631 = vector.load %arg5[%c0_128, %c0_129, %c0_130] : memref<1x16x128xf32, #tpu.memory_space<vmem>>, vector<1x16x128xf32>
    %632 = vector.shape_cast %631 : vector<1x16x128xf32> to vector<16x128xf32>
    %633 = vector.shape_cast %630 : vector<16x128xf32> to vector<1x16x128xf32>
    tpu.vector_store %arg5[%c0_128, %c0_129, %c0_130], %633 {strides = array<i32>} : memref<1x16x128xf32, #tpu.memory_space<vmem>>, vector<1x16x128xf32>,
    %c0_131 = arith.constant 0 : index
    %c0_132 = arith.constant 0 : index
    %c0_133 = arith.constant 0 : index
    %634 = vector.load %arg4[%c0_131, %c0_132, %c0_133] : memref<1x8x128xf32, #tpu.memory_space<vmem>>, vector<1x1x128xf32>
    %635 = vector.shape_cast %634 : vector<1x1x128xf32> to vector<1x128xf32>
    %636 = vector.shape_cast %606 : vector<1x128xf32> to vector<1x1x128xf32>
    tpu.vector_store %arg4[%c0_131, %c0_132, %c0_133], %636 {strides = array<i32>} : memref<1x8x128xf32, #tpu.memory_space<vmem>>, vector<1x1x128xf32>,
    %c0_134 = arith.constant 0 : index
    %c1 = arith.constant 1 : index
    %c0_135 = arith.constant 0 : index
    %637 = vector.load %arg4[%c0_134, %c1, %c0_135] : memref<1x8x128xf32, #tpu.memory_space<vmem>>, vector<1x1x128xf32>
    %638 = vector.shape_cast %637 : vector<1x1x128xf32> to vector<1x128xf32>
    %639 = vector.shape_cast %564 : vector<1x128xf32> to vector<1x1x128xf32>
    tpu.vector_store %arg4[%c0_134, %c1, %c0_135], %639 {strides = array<i32>} : memref<1x8x128xf32, #tpu.memory_space<vmem>>, vector<1x1x128xf32>,
    %c0_136 = arith.constant 0 : index
    %c2 = arith.constant 2 : index
    %c0_137 = arith.constant 0 : index
    %640 = vector.load %arg4[%c0_136, %c2, %c0_137] : memref<1x8x128xf32, #tpu.memory_space<vmem>>, vector<1x1x128xf32>
    %641 = vector.shape_cast %640 : vector<1x1x128xf32> to vector<1x128xf32>
    %642 = vector.shape_cast %584 : vector<1x128xf32> to vector<1x1x128xf32>
    tpu.vector_store %arg4[%c0_136, %c2, %c0_137], %642 {strides = array<i32>} : memref<1x8x128xf32, #tpu.memory_space<vmem>>, vector<1x1x128xf32>,
    %c0_138 = arith.constant 0 : index
    %c3 = arith.constant 3 : index
    %c0_139 = arith.constant 0 : index
    %643 = vector.load %arg4[%c0_138, %c3, %c0_139] : memref<1x8x128xf32, #tpu.memory_space<vmem>>, vector<1x1x128xf32>
    %644 = vector.shape_cast %643 : vector<1x1x128xf32> to vector<1x128xf32>
    %645 = vector.shape_cast %589 : vector<1x128xf32> to vector<1x1x128xf32>
    tpu.vector_store %arg4[%c0_138, %c3, %c0_139], %645 {strides = array<i32>} : memref<1x8x128xf32, #tpu.memory_space<vmem>>, vector<1x1x128xf32>,
    %c0_140 = arith.constant 0 : index
    %c4 = arith.constant 4 : index
    %c0_141 = arith.constant 0 : index
    %646 = vector.load %arg4[%c0_140, %c4, %c0_141] : memref<1x8x128xf32, #tpu.memory_space<vmem>>, vector<1x1x128xf32>
    %647 = vector.shape_cast %646 : vector<1x1x128xf32> to vector<1x128xf32>
    %648 = vector.shape_cast %594 : vector<1x128xf32> to vector<1x1x128xf32>
    tpu.vector_store %arg4[%c0_140, %c4, %c0_141], %648 {strides = array<i32>} : memref<1x8x128xf32, #tpu.memory_space<vmem>>, vector<1x1x128xf32>,
    %c0_142 = arith.constant 0 : index
    %c5 = arith.constant 5 : index
    %c0_143 = arith.constant 0 : index
    %649 = vector.load %arg4[%c0_142, %c5, %c0_143] : memref<1x8x128xf32, #tpu.memory_space<vmem>>, vector<1x1x128xf32>
    %650 = vector.shape_cast %649 : vector<1x1x128xf32> to vector<1x128xf32>
    %651 = vector.shape_cast %599 : vector<1x128xf32> to vector<1x1x128xf32>
    tpu.vector_store %arg4[%c0_142, %c5, %c0_143], %651 {strides = array<i32>} : memref<1x8x128xf32, #tpu.memory_space<vmem>>, vector<1x1x128xf32>,
    %cst_144 = arith.constant 0.000000e+00 : f32
    %652 = vector.broadcast %cst_144 : f32 to vector<2x128xf32>
    %c0_145 = arith.constant 0 : index
    %c6 = arith.constant 6 : index
    %c0_146 = arith.constant 0 : index
    %653 = vector.load %arg4[%c0_145, %c6, %c0_146] : memref<1x8x128xf32, #tpu.memory_space<vmem>>, vector<1x2x128xf32>
    %654 = vector.shape_cast %653 : vector<1x2x128xf32> to vector<2x128xf32>
    %655 = vector.shape_cast %652 : vector<2x128xf32> to vector<1x2x128xf32>
    tpu.vector_store %arg4[%c0_145, %c6, %c0_146], %655 {strides = array<i32>} : memref<1x8x128xf32, #tpu.memory_space<vmem>>, vector<1x2x128xf32>,
    return
  }
  func.func @transform_0(%arg0: i32) -> (i32, i32, i32) {
    %c0_i32 = arith.constant 0 : i32
    %c0_i32_0 = arith.constant 0 : i32
    %c0_i32_1 = arith.constant 0 : i32
    return %arg0, %c0_i32, %c0_i32_0 : i32, i32, i32
  }
  func.func @transform_1(%arg0: i32) -> (i32, i32, i32) {
    %c0_i32 = arith.constant 0 : i32
    %c0_i32_0 = arith.constant 0 : i32
    %c0_i32_1 = arith.constant 0 : i32
    return %arg0, %c0_i32, %c0_i32_0 : i32, i32, i32
  }
  func.func @transform_2(%arg0: i32) -> (i32, i32, i32) {
    %c0_i32 = arith.constant 0 : i32
    %c0_i32_0 = arith.constant 0 : i32
    %c0_i32_1 = arith.constant 0 : i32
    return %arg0, %c0_i32, %c0_i32_0 : i32, i32, i32
  }
  func.func @transform_3(%arg0: i32) -> (i32, i32, i32) {
    %c0_i32 = arith.constant 0 : i32
    %c0_i32_0 = arith.constant 0 : i32
    %c0_i32_1 = arith.constant 0 : i32
    return %arg0, %c0_i32, %c0_i32_0 : i32, i32, i32
  }
  func.func @transform_4(%arg0: i32) -> (i32, i32, i32) {
    %c0_i32 = arith.constant 0 : i32
    %c0_i32_0 = arith.constant 0 : i32
    %c0_i32_1 = arith.constant 0 : i32
    return %arg0, %c0_i32, %c0_i32_0 : i32, i32, i32
  }
}

</mosaic_0001>

<bundles_post_ra>
// kernel: tpu_custom_call.1
= control target key start
LH: loop header
LB: loop body
LE: loop exit
PB: predicated region body
PF: predicated region fallthrough
CT: control target
= control target key end

     0   :  { %s1933_s0 = inlined_call_operand.hbm [shape: f32[2,16,128], index: 0, kind: input, shape index: {}]   ;;  %s1934_s1 = inlined_call_operand.hbm [shape: f32[2,8,128], index: 1, kind: input, shape index: {}]   ;;  %s1935_s2 = inlined_call_operand.hbm [shape: f32[2,8,8], index: 2, kind: input, shape index: {}]   ;;  %s1936_s3 = inlined_call_operand.hbm [shape: f32[2,8,128], index: 3, kind: output, shape index: {0}]   ;;  %s1937_s4 = inlined_call_operand.hbm [shape: f32[2,16,128], index: 4, kind: output, shape index: {1}]  }
   0x1   :  { %1940 = sst [smem:[#allocation17_spill]] %s1933_s0 }
   0x2   :  { %1941 = sst [smem:[#allocation18_spill]] %s1934_s1 }
   0x3   :  { %10 = vsyncpa [#allocation3], 0 }
   0x4   :  { %12 = vsyncpa [#allocation3 + $0x1], 0 }
   0x5   :  { %13 = vsyncpa [#allocation6], 0 }
   0x6   :  { %15 = vsyncpa [#allocation6 + $0x1], 0 }
   0x7   :  { %16 = vsyncpa [#allocation4], 0 }
   0x8   :  { %18 = vsyncpa [#allocation4 + $0x1], 0 }
   0x9   :  { %19 = vsyncpa [#allocation10], 0 }
   0xa   :  { %21 = vsyncpa [#allocation10 + $0x1], 0  ;;  %s1464_s15 = smov 0   ;;  %s1466_s16 = smov 0  }
   0xb   :  { %s1468_s17 = smov 0   ;;  %s1470_s18 = smov 0  }
   0xc LB: > { %1942 = sst [smem:[#allocation15_spill]] %s1418_s17  ;;  %s1485_s19 = sadd.s32 4294967295, %s1422_s18   ;;  %s1422_s18 = sphi %s1470_s18, %s1960_s18   ;;  %s1418_s17 = sphi %s1468_s17, %s1957_s17   ;;  %s1414_s16 = sphi %s1466_s16, %s1959_s16   ;;  %s1410_s15 = sphi %s1464_s15, %s1958_s15  }
   0xd   : > { %s1092_s20 = sadd.s32 4294967294, %s1422_s18   ;;  %s1489_s21 = sadd.s32 1, %s1422_s18  }
   0xe   : > { %s34_s22 = sadd.s32 1, %s1418_s17  ;;  %s31_s23 = ssub.s32 %s1422_s18, %s1489_s21 }
   0xf   : > { %p41_p0 = scmp.ne.s32.totalorder %s1418_s17, %s1414_s16  ;;  %p32_p1 = scmp.eq.s32.totalorder %s31_s23, 0 }
  0x10   : > { %p42_p2 = scmp.eq.s32.totalorder %s1422_s18, 0  ;;  %p47_p3 = scmp.ne.s32.totalorder %s1414_s16, %s1410_s15 }
  0x11   : > { %p48_p4 = scmp.eq.s32.totalorder %s1485_s19, 0  ;;  %p123_p7 = scmp.eq.s32.totalorder %s1485_s19, 1 }
  0x12   : > { %s1501_s24 = scalar_select %p32_p1, %s1418_s17, %s34_s22  }
  0x13   : > { %p43_p5 = por %p42_p2, %p41_p0  ;;  %p1503_p6 = por %p48_p4, %p47_p3 }
  0x14   : > { %1943 = sst [smem:[#allocation16_spill]] %s1501_s24  ;;  %p129_p8 = scmp.eq.s32.totalorder %s1092_s20, 1 }
  0x15   : > { %p1094_p9 = scmp.ge.s32.totalorder %s1422_s18, 2  ;;  %p1160_p10 = scmp.lt.s32.totalorder %s1422_s18, 2 }
  0x16   : > { %p1510_p11 = por %p123_p7, %p41_p0  ;;  %p1514_p12 = por %p129_p8, %p47_p3 }
  0x17   : > { %s1519_s28 = sand.u32 1, %s1418_s17   ;;  %p1521_p13 = pnand %p1160_p10, %p43_p5 }
  0x18   : > { %s197_s30 = sand.u32 1, %s1422_s18   ;;  %s1938_s5 = sshll.u32 %s1519_s28, 3 }
  0x19   : > { %s1099_s6 = sshll.u32 %s1422_s18, 3  ;;  %s1948_s1 = sld [smem:[#allocation18_spill]] }
  0x1a   : > { %s201_s10 = scalar_lea.vmem [#allocation5], %s1938_s5  ;;  %s1533_s13 = scalar_lea.sflag [#allocation6], %s197_s30 }
  0x1b   : > { %s209_s11 = sshll.u32 %s201_s10, 4  ;;  %p1234_p1 = pneg %p1521_p13  ;;  %s210_s11 = int_to_ptr.vmem [resolvable:$true] %s209_s11 }
  0x1f   : > { %s205_s9 = scalar_lea.hbm %s1948_s1, %s1099_s6  ;;  %s1237_s7 = scalar_lea.hbm %s1948_s1, 16 }
  0x20   : > { %s207_s12 = sshll.u32 %s205_s9, 4  ;;  %s208_s12 = int_to_ptr.hbm [resolvable:$true] %s207_s12 }
  0x21   : > { %s1230_s14 = sshra.s32 %s208_s12, 4  ;;  %s1231_s14 = int_to_ptr.hbm [resolvable:$true] %s1230_s14 }
  0x22   : > { %s1232_s20 = scalar_lea.hbm %s1231_s14, 8  ;;  %p1238_p4 = scmp.lt.s32.totalorder %s1231_s14, %s1948_s1 }
  0x23   : > { %p1233_p0 = scmp.ne.s32.totalorder %s1231_s14, %s1232_s20  ;;  %p1239_p5 = scmp.lt.s32.totalorder %s1237_s7, %s1232_s20 }
  0x25   : > { %p1235_p2 = pnand %p1234_p1, %p1233_p0  ;;  %p1240_p7 = por %p1239_p5, %p1238_p4 }
  0x27   : > { %p1236_p3 = pneg %p1235_p2 }
  0x29   : > { %p1241_p8 = pnand %p1240_p7, %p1236_p3 }
  0x2b   : > { %1244 = shalt.err (!%p1241_p8)
}
  0x2c   : > { %1149 = dma.hbm_to_vmem [thread:$0]  (!%p1521_p13), %s208_s12, 128, %s210_s11, %s1533_s13  }
  0x2d   : > { %s1552_s22 = scalar_lea.hbm %s1935_s2, %s1099_s6  ;;  %p1102_p10 = scmp.ge.s32.totalorder %s1422_s18, 1 }
  0x2e   : > { %p233_p0 = scmp.lt.s32.totalorder %s1422_s18, 3  ;;  %s1095_s14 = sshll.u32 %s1519_s28, 4 }
  0x2f   : > { %s1131_s20 = sshll.u32 %s1422_s18, 4  ;;  %s1950_s0 = sld [smem:[#allocation17_spill]] }
  0x30   : > { %p1558_p2 = pnand %p1102_p10, %p233_p0  ;;  %s179_s11 = scalar_lea.vmem [#allocation2], %s1095_s14 }
  0x31   : > { %s187_s12 = sshll.u32 %s179_s11, 4  ;;  %s226_s6 = sshll.u32 %s1552_s22, 4  ;;  %s188_s12 = int_to_ptr.vmem [resolvable:$true] %s187_s12  ;;  %s227_s6 = int_to_ptr.hbm [resolvable:$true] %s226_s6 }
  0x32   : > { %s176_s30 = scalar_lea.sflag [#allocation3], %s1519_s28 }
  0x35   : > { %s184_s9 = scalar_lea.hbm %s1950_s0, %s1131_s20  ;;  %s1267_s7 = scalar_lea.hbm %s1950_s0, 32 }
  0x36   : > { %s185_s5 = sshll.u32 %s184_s9, 4  ;;  %s186_s5 = int_to_ptr.hbm [resolvable:$true] %s185_s5 }
  0x37   : > { %s1260_s10 = sshra.s32 %s186_s5, 4  ;;  %s1261_s10 = int_to_ptr.hbm [resolvable:$true] %s1260_s10 }
  0x38   : > { %s1262_s1 = scalar_lea.hbm %s1261_s10, 16  ;;  %p1268_p7 = scmp.lt.s32.totalorder %s1261_s10, %s1950_s0 }
  0x39   : > { %p1263_p3 = scmp.ne.s32.totalorder %s1261_s10, %s1262_s1  ;;  %p1269_p8 = scmp.lt.s32.totalorder %s1267_s7, %s1262_s1 }
  0x3b   : > { %p1265_p4 = pnand %p1263_p3, %p1234_p1  ;;  %p1270_p10 = por %p1269_p8, %p1268_p7 }
  0x3d   : > { %p1266_p5 = pneg %p1265_p4 }
  0x3f   : > { %p1271_p0 = pnand %p1270_p10, %p1266_p5 }
  0x41   : > { %1274 = shalt.err (!%p1271_p0)
}
  0x42   : > { %s1424_s22 = smov 128   ;;  %s1425_s8 = smov 8  }
  0x43   : > { %1146 = dma.hbm_to_vmem [thread:$0]  (!%p1521_p13), %s186_s5, 256, %s188_s12, %s176_s30, %s1424_s22, %s1424_s22, %s1425_s8  }
  0x44   : > { %s1951_s9 = sshll.u32 %s1519_s28, 3  ;;  %s1290_s24 = sshra.s32 %s227_s6, 4  ;;  %s1291_s24 = int_to_ptr.hbm [resolvable:$true] %s1290_s24 }
  0x45   : > { %s220_s11 = scalar_lea.vmem [#allocation7], %s1951_s9  ;;  %s1292_s20 = scalar_lea.hbm %s1291_s24, 8 }
  0x46   : > { %s228_s17 = sshll.u32 %s220_s11, 4  ;;  %p1293_p3 = scmp.ne.s32.totalorder %s1291_s24, %s1292_s20  ;;  %s229_s17 = int_to_ptr.vmem [resolvable:$true] %s228_s17 }
  0x47   : > { %s1297_s7 = scalar_lea.hbm %s1935_s2, 16  ;;  %p1298_p7 = scmp.lt.s32.totalorder %s1291_s24, %s1935_s2 }
  0x48   : > { %p1295_p4 = pnand %p1293_p3, %p1234_p1  ;;  %p1299_p8 = scmp.lt.s32.totalorder %s1297_s7, %s1292_s20 }
  0x4a   : > { %p1296_p5 = pneg %p1295_p4  ;;  %p1300_p10 = por %p1299_p8, %p1298_p7 }
  0x4c   : > { %p1301_p0 = pnand %p1300_p10, %p1296_p5 }
  0x4e   : > { %1304 = shalt.err (!%p1301_p0)
}
  0x4f   : > { %1152 = dma.hbm_to_vmem [thread:$0]  (!%p1521_p13), %s227_s6, 128, %s229_s17, %s1533_s13  }
  0x50   : > { %237 = sbr.rel (%p1558_p2) target bundleno = 3773 (0xebd), region = 32  ;;  %s1595_s28 = sand.u32 (!%p1558_p2), 1, %s1414_s16  }
  0x51   : > { %s1103_s0 = sshll.u32 (!%p1558_p2), %s1595_s28, 4  ;;  %s240_s5 = scalar_lea.sflag (!%p1558_p2), [#allocation3], %s1595_s28 }
  0x52   : > { %s1601_s12 = scalar_lea.vmem (!%p1558_p2), [#allocation2], %s1103_s0 }
  0x55   : > { %1393 = dma.done.wait (%p1503_p6), %s240_s5, 256  }
  0x56   : > { %1395 = vsyncadd (%p1503_p6), %s240_s5, 4294967040  ;;  %s249_s29 = sand.u32 1, %s1485_s19   ;;  %s1609_s13 = sshll.u32 %s1595_s28, 3 }
  0x57   : > { %s250_s23 = scalar_lea.sflag [#allocation6], %s249_s29  ;;  %s253_s6 = scalar_lea.vmem [#allocation5], %s1609_s13 }
  0x58   : > { %1397 = dma.done.wait (%p1503_p6), %s250_s23, 256  }
  0x59   : > { %1399 = vsyncadd (%p1503_p6), %s250_s23, 4294967040  ;;  %s263_s30 = scalar_lea.vmem [#allocation7], %s1609_s13  ;;  %s1426_s22 = smov 2   ;;  %v1427_v1 = vmov 2   ;;  %v1428_v2 = vmov 3   ;;  %v1429_v3 = vmov 0  }
  0x5a   : > { %v1617_v0 = vld [vmem:[%s263_s30] sm:$0xff]  ;;  %1209 = vset.pattern.permute.xlu1 %v1427_v1  ;;  %1213 = vset.pattern.permute.xlu0 %v1427_v1  ;;  %v1430_v4 = vmov 1   ;;  %v1431_v5 = vmov 6   ;;  %v1432_v6 = vmov 4   ;;  %s1433_s25 = smov 127   ;;  %v1668_v30 = vld [vmem:[%s253_s6] sm:$0xff] }
  0x5b   : > { %461 = vrot.lane.b32.xlu0 %v1617_v0, %s1426_s22  ;;  %472 = vperm.xlu1 %1209, %v1617_v0   ;;  %vm325_vm0 = vcmp.eq.f32.partialorder %v1617_v0, 1.0  ;;  %vm352_vm1 = vcmp.eq.f32.partialorder %v1617_v0, 4.0  ;;  %vm370_vm2 = vcmp.eq.f32.partialorder %v1617_v0, 6.0  ;;  %vm316_vm3 = vcmp.eq.f32.partialorder %v1617_v0, 0.0  ;;  %v1689_v54 = vld [vmem:[%s1601_s12] sm:$0xff]  ;;  %s1819_s8 = scalar_lea.vmem [#allocation8], %s1609_s13 }
  0x5c   : > { %1211 = vset.pattern.permute.xlu2 %v1428_v2  ;;  %v326_v7 = vsel %vm325_vm0, 1, %v1429_v3  ;;  %v353_v11 = vsel %vm352_vm1, 1, %v1429_v3  ;;  %v371_v12 = vsel %vm370_vm2, 1, %v1429_v3  ;;  %v317_v13 = vsel %vm316_vm3, 1, %v1429_v3  ;;  %s1126_s9 = sshll.u32 %s1485_s19, 3  ;;  %s1132_s11 = sshll.u32 %s1485_s19, 4 }
  0x5d   : > { %486 = vperm.xlu2 %1211, %v1617_v0   ;;  %vm397_vm4 = vcmp.eq.f32.partialorder %v1617_v0, 9.0  ;;  %vm334_vm5 = vcmp.eq.f32.partialorder %v1617_v0, 2.0  ;;  %vm424_vm6 = vcmp.eq.f32.partialorder %v1617_v0, 12.0  ;;  %vm361_vm7 = vcmp.eq.f32.partialorder %v1617_v0, 5.0  ;;  %s924_s20 = scalar_lea.hbm %s1936_s3, %s1126_s9  ;;  %s939_s7 = scalar_lea.hbm %s1937_s4, %s1132_s11 }
  0x5e   : > { %v398_v14 = vsel %vm397_vm4, 1, %v1429_v3  ;;  %v335_v15 = vsel %vm334_vm5, 1, %v1429_v3  ;;  %v425_v16 = vsel %vm424_vm6, 1, %v1429_v3  ;;  %v362_v17 = vsel %vm361_vm7, 1, %v1429_v3  ;;  %s926_s14 = sshll.u32 %s1819_s8, 4  ;;  %s928_s5 = sshll.u32 %s924_s20, 4  ;;  %s927_s14 = int_to_ptr.vmem [resolvable:$true] %s926_s14  ;;  %s929_s5 = int_to_ptr.hbm [resolvable:$true] %s928_s5 }
  0x5f   : > { %vm451_vm8 = vcmp.eq.f32.partialorder %v1617_v0, 15.0  ;;  %vm379_vm9 = vcmp.eq.f32.partialorder %v1617_v0, 7.0  ;;  %vm406_vm10 = vcmp.eq.f32.partialorder %v1617_v0, 10.0  ;;  %vm433_vm11 = vcmp.eq.f32.partialorder %v1617_v0, 13.0  ;;  %s1872_s19 = scalar_lea.vmem [#allocation9], %s1103_s0  ;;  %s942_s29 = sshll.u32 %s939_s7, 4  ;;  %s1878_s29 = int_to_ptr.hbm [resolvable:$true] %s942_s29 }
  0x60   : > { %v452_v18 = vsel %vm451_vm8, 1, %v1429_v3  ;;  %v380_v19 = vsel %vm379_vm9, 1, %v1429_v3  ;;  %v407_v20 = vsel %vm406_vm10, 1, %v1429_v3  ;;  %vm343_vm12 = vcmp.eq.f32.partialorder %v1617_v0, 3.0  ;;  %s909_s0 = scalar_lea.sflag [#allocation4], %s1595_s28  ;;  %s1334_s13 = sshra.s32 %s929_s5, 4  ;;  %s1335_s13 = int_to_ptr.hbm [resolvable:$true] %s1334_s13 }
  0x61   : > { %v434_v23 = vsel %vm433_vm11, 1, %v1429_v3  ;;  %v344_v24 = vsel %vm343_vm12, 1, %v1429_v3  ;;  %vm388_vm13 = vcmp.eq.f32.partialorder %v1617_v0, 8.0  ;;  %vm415_vm14 = vcmp.eq.f32.partialorder %v1617_v0, 11.0  ;;  %s1336_s23 = scalar_lea.hbm %s1335_s13, 8  ;;  %s1340_s22 = scalar_lea.hbm %s1936_s3, 16 }
  0x62   : > { %v389_v25 = vsel %vm388_vm13, 1, %v1429_v3  ;;  %v416_v26 = vsel %vm415_vm14, 1, %v1429_v3  ;;  %vm442_vm15 = vcmp.eq.f32.partialorder %v1617_v0, 14.0  ;;  %v467_v31 = vrot.slane %v1668_v30, 6  ;;  %p1337_p6 = scmp.ne.s32.totalorder %s1335_s13, %s1336_s23  ;;  %p1341_p2 = scmp.lt.s32.totalorder %s1335_s13, %s1936_s3 }
  0x63   : > { %1210 = vset.pattern.permute.xlu1 %v1429_v3  ;;  %v443_v27 = vsel %vm442_vm15, 1, %v1429_v3  ;;  %v475_v36 = vperm.slane %v1668_v30, 2  ;;  %v489_v37 = vperm.slane %v1668_v30, 3  ;;  %v481_v38 = vperm.slane %v1668_v30, 0  ;;  %p1342_p3 = scmp.lt.s32.totalorder %s1340_s22, %s1336_s23 }
  0x64   : > { %478 = vperm.xlu1 %1210, %v1617_v0   ;;  %v469_v33 = vsub.f32 %v1668_v30, %v467_v31  ;;  %v495_v39 = vperm.slane %v1668_v30, 1  ;;  %v322_v60 = vperm.slane %v1689_v54, 0  ;;  %v331_v62 = vperm.slane %v1689_v54, 1  ;;  %p1338_p13 = pnand %p1337_p6, %p1510_p11 }
  0x65   : > { %1212 = vset.pattern.permute.xlu2 %v1430_v4  ;;  %p1343_p4 = por %p1342_p3, %p1341_p2 }
  0x66   : > { %492 = vperm.xlu2 %1212, %v1617_v0   ;;  %v470_v35 = vadd.f32 1e-07, %v469_v33  ;;  %p1339_p1 = pneg %p1338_p13 }
  0x68   : > { %v506_v44 = vrot.slane %v470_v35, 1  ;;  %v367_v35 = vperm.slane %v1689_v54, 5  ;;  %p1344_p5 = pnand %p1343_p4, %p1339_p1 }
  0x6a   : > { %v508_v48 = vmul.f32 %v506_v44, %v469_v33 }
  0x6c   : > { %1214 = vset.pattern.permute.xlu1 %v1431_v5  ;;  %v514_v57 = vperm.slane %v508_v48, 2 }
  0x6d   : > { %565 = vperm.xlu1 %1214, %v1617_v0  }
  0x6e   : > { %1215 = vset.pattern.permute.xlu2 %v1432_v6 }
  0x6f   : > { %319 = vperm.xlu2 %1215, %v317_v13  }
  0x75   : > { %1216 = vset.pattern.permute.xlu1 %v1432_v6 }
  0x76   : > { %328 = vperm.xlu1 %1216, %v326_v7  }
  0x77   : > { %337 = vperm.xlu2 %1215, %v335_v15  }
  0x7e   : > { %355 = vperm.xlu1 %1216, %v353_v11  }
  0x7f   : > { %364 = vperm.xlu2 %1215, %v362_v17  }
  0x86   : > { %373 = vperm.xlu1 %1216, %v371_v12  }
  0x87   : > { %382 = vperm.xlu2 %1215, %v380_v19  }
  0x8e   : > { %400 = vperm.xlu1 %1216, %v398_v14   ;;  %v349_v14 = vperm.slane %v1689_v54, 3 }
  0x8f   : > { %409 = vperm.xlu2 %1215, %v407_v20   ;;  %v358_v20 = vperm.slane %v1689_v54, 4 }
  0x96   : > { %427 = vperm.xlu1 %1216, %v425_v16  }
  0x97   : > { %436 = vperm.xlu2 %1215, %v434_v23  }
  0x9e   : > { %454 = vperm.xlu1 %1216, %v452_v18   ;;  %v563_v18 = vperm.slane %v1668_v30, 4 }
  0xb7   : > { %v1664_v29 = vpop.permute.xlu2 %486 }
  0xb8   : > { %v490_v41 = vmin.f32 %v1664_v29, %v489_v37  ;;  %v536_v51 = vmax.f32 %v1664_v29, %v489_v37 }
  0xc0   : > { %v1674_v34 = vpop.permute.xlu2 %492 }
  0xc1   : > { %v496_v43 = vmax.f32 %v1674_v34, %v495_v39  ;;  %v537_v53 = vmin.f32 %v1674_v34, %v495_v39 }
  0xc3   : > { %v497_v47 = vsub.f32 %v490_v41, %v496_v43  ;;  %v538_v59 = vsub.f32 %v536_v51, %v537_v53 }
  0xc5   : > { %v498_v56 = vmax.f32 %v497_v47, 0.0 }
  0xc9   : > { %v320_v49 = vpop.permute.xlu2 %319 }
  0xca   : > { %vm321_vm0 = vcmp.eq.s32.totalorder %v320_v49, 1 }
  0xcb   : > { %v323_v4 = vsel %vm321_vm0, %v322_v60, 0.0 }
  0xcd   : > { %v462_v8 = vpop.permute.xlu0 %461  ;;  %v1662_v28 = vpop.permute.xlu1 %472 }
  0xce   : > { %v464_v9 = vsub.f32 %v1617_v0, %v462_v8  ;;  %v476_v40 = vmin.f32 %v1662_v28, %v475_v36  ;;  %v533_v50 = vmax.f32 %v1662_v28, %v475_v36  ;;  %v340_v8 = vperm.slane %v1689_v54, 2 }
  0xcf   : > { %v1434_v36 = vmov 4.0  }
  0xd0   : > { %v465_v10 = vadd.f32 1e-07, %v464_v9 }
  0xd1   : > { %v338_v7 = vpop.permute.xlu2 %337 }
  0xd2   : > { %501 = vrot.lane.b32.xlu0 %v465_v10, %s1433_s25  ;;  %v540_v10 = vmul.f32 %v538_v59, %v538_v59  ;;  %vm339_vm2 = vcmp.eq.s32.totalorder %v338_v7, 1 }
  0xd3   : > { %v341_v13 = vsel %vm339_vm2, %v340_v8, 0.0 }
  0xd6   : > { %v1671_v32 = vpop.permute.xlu1 %478 }
  0xd7   : > { %v482_v42 = vmax.f32 %v1671_v32, %v481_v38  ;;  %v534_v52 = vmin.f32 %v1671_v32, %v481_v38 }
  0xd9   : > { %v483_v46 = vsub.f32 %v476_v40, %v482_v42  ;;  %v535_v58 = vsub.f32 %v533_v50, %v534_v52  ;;  %v365_v33 = vpop.permute.xlu2 %364 }
  0xda   : > { %vm366_vm5 = vcmp.eq.s32.totalorder %v365_v33, 1 }
  0xdb   : > { %v484_v55 = vmax.f32 %v483_v46, 0.0  ;;  %v368_v44 = vsel %vm366_vm5, %v367_v35, 0.0  ;;  %v376_v46 = vperm.slane %v1689_v54, 6 }
  0xdd   : > { %v1693_v1 = vmul.f32 %v498_v56, %v484_v55 }
  0xdf   : > { %v566_v45 = vpop.permute.xlu1 %565 }
  0xe8   : > { %v329_v61 = vpop.permute.xlu1 %328 }
  0xe9   : > { %vm330_vm1 = vcmp.eq.s32.totalorder %v329_v61, 1  ;;  %v383_v61 = vpop.permute.xlu2 %382 }
  0xea   : > { %v332_v5 = vsel %vm330_vm1, %v331_v62, 0.0  ;;  %v385_v62 = vperm.slane %v1689_v54, 7  ;;  %vm384_vm11 = vcmp.eq.s32.totalorder %v383_v61, 1 }
  0xeb   : > { %v333_v12 = vadd.f32 %v332_v5, %v323_v4 }
  0xec   : > { %v386_v54 = vsel %vm384_vm11, %v385_v62, 0.0 }
  0xed   : > { %v342_v19 = vadd.f32 %v341_v13, %v333_v12 }
  0xf0   : > { %v356_v17 = vpop.permute.xlu1 %355 }
  0xf1   : > { %vm357_vm4 = vcmp.eq.s32.totalorder %v356_v17, 1  ;;  %v410_v35 = vpop.permute.xlu2 %409 }
  0xf2   : > { %v359_v31 = vsel %vm357_vm4, %v358_v20, 0.0  ;;  %vm411_vm2 = vcmp.eq.s32.totalorder %v410_v35, 1 }
 0x144   : > { %v502_v21 = vpop.permute.xlu0 %501 }
 0x145   : > { %v504_v22 = vmul.f32 %v502_v21, %v464_v9  ;;  %v539_v9 = vmul.f32 %v535_v58, %v535_v58 }
 0x147   : > { %511 = vperm.xlu0 %1213, %v504_v22   ;;  %v541_v15 = vadd.f32 %v540_v10, %v539_v9 }
 0x149   : > { %v1700_v23 = vadd.f32 1e-07, %v541_v15 }
 0x14b   : > { %vm593_vm14 = vweird.f32 %v1700_v23 }
 0x14f   : > { %1217 = vset.pattern.permute.xlu0 %v1432_v6 }
 0x150   : > { %346 = vperm.xlu0 %1217, %v344_v24  }
 0x158   : > { %391 = vperm.xlu0 %1217, %v389_v25   ;;  %v543_v25 = vrot.slane %v1668_v30, 2 }
 0x15a   : > { %v545_v41 = vadd.f32 %v543_v25, %v1668_v30 }
 0x15c   : > { %v546_v52 = vperm.slane %v545_v41, 0  ;;  %v550_v56 = vperm.slane %v545_v41, 1 }
 0x15e   : > { %v547_v5 = vsub.f32 %v546_v52, %v1671_v32 }
 0x160   : > { %418 = vperm.xlu0 %1217, %v416_v26   ;;  %v568_v26 = vsub.f32 %v563_v18, %v566_v45  ;;  %v374_v45 = vpop.permute.xlu1 %373  ;;  %v548_v13 = vsub.f32 %v547_v5, %v1662_v28 }
 0x161   : > { %vm375_vm8 = vcmp.eq.s32.totalorder %v374_v45, 1 }
 0x162   : > { %v569_v42 = vmul.f32 %v568_v26, %v568_v26  ;;  %v377_v58 = vsel %vm375_vm8, %v376_v46, 0.0 }
 0x168   : > { %445 = vperm.xlu0 %1217, %v443_v27   ;;  %v401_v18 = vpop.permute.xlu1 %400 }
 0x169   : > { %vm402_vm13 = vcmp.eq.s32.totalorder %v401_v18, 1 }
 0x1b9   : > { %v512_v63 = vpop.permute.xlu0 %511 }
 0x1ba   : > { %v515_v2 = vadd.f32 %v514_v57, %v512_v63  ;;  %v1711_v57 = vmul.f32 0.40528473, %v569_v42 }
 0x1bc   : > { %v516_v3 = vsub.f32 %v515_v2, %v1693_v1 }
 0x1be   : > { %v517_v11 = vadd.f32 1e-07, %v516_v3  ;;  %v1723_v3 = vld [vmem:[%s1601_s12 + $0x8] sm:$0xff]  ;;  %s940_s12 = sshll.u32 %s1872_s19, 4  ;;  %s1876_s12 = int_to_ptr.vmem [resolvable:$true] %s940_s12 }
 0x1bf   : > { %v394_v9 = vperm.slane %v1723_v3, 0 }
 0x1c0   : > { %1220 = vrcp.f32 %v517_v11  ;;  %v529_v38 = vand.u32 2147483648, %v517_v11  ;;  %v527_v40 = vand.u32 2147483647, %v517_v11  ;;  %vm523_vm7 = vweird.f32 %v517_v11 }
 0x1c1   : > { %1222 = vrcp.f32 %v1434_v36  ;;  %v412_v36 = vperm.slane %v1723_v3, 2 }
 0x1c2   : > { %v347_v16 = vpop.permute.xlu0 %346  ;;  %1224 = vrcp.f32 %v1700_v23  ;;  %v530_v48 = vor.u32 1.1754944e-38, %v529_v38  ;;  %vm528_vm10 = vcmp.eq.f32.partialorder %v527_v40, 8.507059e+37  ;;  %v597_v40 = vand.u32 2147483647, %v1700_v23 }
 0x1c3   : > { %vm348_vm3 = vcmp.eq.s32.totalorder %v347_v16, 1 }
 0x1c4   : > { %v350_v21 = vsel %vm348_vm3, %v349_v14, 0.0 }
 0x1c5   : > { %v351_v27 = vadd.f32 %v350_v21, %v342_v19  ;;  %v403_v19 = vperm.slane %v1723_v3, 1 }
 0x1c6   : > { %v1221_v22 = vpop.eup %1220 }
 0x1c7   : > { %v519_v24 = vmul.f32 %v1221_v22, %v517_v11  ;;  %vm524_vm6 = vweird.f32 %v1221_v22  ;;  %v360_v43 = vadd.f32 %v359_v31, %v351_v27  ;;  %v1707_v49 = vpop.eup %1222  ;;  %v599_v31 = vand.u32 2147483648, %v1700_v23 }
 0x1c8   : > { %vm525_vm9 = vmor %vm523_vm7, %vm524_vm6  ;;  %v1709_v51 = vpop.eup %1224  ;;  %v556_v60 = vmul.f32 4.0, %v1707_v49  ;;  %vm560_vm0 = vweird.f32 %v1707_v49  ;;  %v404_v33 = vsel %vm402_vm13, %v403_v19, 0.0  ;;  %vm598_vm6 = vcmp.eq.f32.partialorder %v597_v40, 8.507059e+37 }
 0x1c9   : > { %v520_v37 = vsub.f32 1.0, %v519_v24  ;;  %v369_v55 = vadd.f32 %v368_v44, %v360_v43  ;;  %v589_v2 = vmul.f32 %v1709_v51, %v1700_v23  ;;  %vm594_vm15 = vweird.f32 %v1709_v51 }
 0x1ca   : > { %v392_v8 = vpop.permute.xlu0 %391  ;;  %v557_v10 = vsub.f32 1.0, %v556_v60  ;;  %vm1740_vm1 = vmor %vm593_vm14, %vm594_vm15  ;;  %v421_v44 = vperm.slane %v1723_v3, 3  ;;  %v413_v23 = vsel %vm411_vm2, %v412_v36, 0.0  ;;  %v428_v60 = vpop.permute.xlu1 %427  ;;  %v308_v40 = vlaneseq }
 0x1cb   : > { %v521_v39 = vmul.f32 %v1221_v22, %v520_v37  ;;  %v378_v4 = vadd.f32 %v377_v58, %v369_v55  ;;  %vm393_vm12 = vcmp.eq.s32.totalorder %v392_v8, 1  ;;  %v590_v11 = vsub.f32 1.0, %v589_v2 }
 0x1cc   : > { %v395_v15 = vsel %vm393_vm12, %v394_v9, 0.0  ;;  %v558_v16 = vmul.f32 %v1707_v49, %v557_v10  ;;  %v611_v55 = vperm.slane %v1668_v30, 5 }
 0x1cd   : > { %v522_v47 = vadd.f32 %v1221_v22, %v521_v39  ;;  %v387_v12 = vadd.f32 %v386_v54, %v378_v4  ;;  %v591_v17 = vmul.f32 %v1709_v51, %v590_v11 }
 0x1ce   : > { %v559_v25 = vadd.f32 %v1707_v49, %v558_v16  ;;  %v612_v9 = vsub.f32 %v611_v55, %v1671_v32 }
 0x1cf   : > { %v526_v50 = vsel %vm525_vm9, %v1221_v22, %v522_v47  ;;  %v396_v20 = vadd.f32 %v395_v15, %v387_v12  ;;  %v549_v22 = vmul.f32 %v548_v13, %v548_v13  ;;  %v592_v27 = vadd.f32 %v1709_v51, %v591_v17 }
 0x1d0   : > { %v531_v53 = vsel %vm528_vm10, %v530_v48, %v526_v50  ;;  %v561_v47 = vsel %vm560_vm0, %v1707_v49, %v559_v25  ;;  %v600_v50 = vor.u32 1.1754944e-38, %v599_v31  ;;  %vm429_vm9 = vcmp.eq.s32.totalorder %v428_v60, 1 }
 0x1d1   : > { %v1714_v59 = vmul.f32 %v531_v53, %v1693_v1  ;;  %v551_v1 = vsub.f32 %v550_v56, %v1674_v34  ;;  %v405_v41 = vadd.f32 %v404_v33, %v396_v20  ;;  %v596_v48 = vsel %vm1740_vm1, %v1709_v51, %v592_v27 }
 0x1d2   : > { %v419_v37 = vpop.permute.xlu0 %418  ;;  %v613_v56 = vperm.slane %v1668_v30, 6  ;;  %v601_v2 = vsel %vm598_vm6, %v600_v50, %v596_v48  ;;  %v430_v51 = vperm.slane %v1723_v3, 4  ;;  %v437_v30 = vpop.permute.xlu2 %436  ;;  %v439_v13 = vperm.slane %v1723_v3, 5 }
 0x1d3   : > { %v571_v63 = vsub.f32 %v1711_v57, %v1714_v59  ;;  %v552_v14 = vsub.f32 %v551_v1, %v1664_v29  ;;  %vm420_vm4 = vcmp.eq.s32.totalorder %v419_v37, 1  ;;  %v414_v53 = vadd.f32 %v413_v23, %v405_v41 }
 0x1d4   : > { %v422_v61 = vsel %vm420_vm4, %v421_v44, 0.0  ;;  %v616_v1 = vsub.f32 %v1662_v28, %v611_v55  ;;  %v614_v10 = vsub.f32 %v613_v56, %v1674_v34  ;;  %v431_v12 = vsel %vm429_vm9, %v430_v51, 0.0 }
 0x1d5   : > { %v572_v7 = vadd.f32 1.0000001, %v571_v63  ;;  %v553_v24 = vmul.f32 %v552_v14, %v552_v14  ;;  %v423_v5 = vadd.f32 %v422_v61, %v414_v53  ;;  %v448_v14 = vperm.slane %v1723_v3, 6 }
 0x1d6   : > { %vm438_vm10 = vcmp.eq.s32.totalorder %v437_v30, 1  ;;  %v615_v18 = vmin.f32 %v612_v9, %v614_v10  ;;  %v309_v41 = vand.u32 127, %v308_v40 }
 0x1d7   : > { %1226 = vrcp.f32 %v572_v7  ;;  %v554_v42 = vadd.f32 %v553_v24, %v549_v22  ;;  %v584_v43 = vand.u32 2147483648, %v572_v7  ;;  %v582_v46 = vand.u32 2147483647, %v572_v7 }
 0x1d8   : > { %vm578_vm5 = vweird.f32 %v572_v7  ;;  %v432_v16 = vadd.f32 %v431_v12, %v423_v5  ;;  %v440_v20 = vsel %vm438_vm10, %v439_v13, 0.0 }
 0x1d9   : > { %v585_v58 = vor.u32 1.1754944e-38, %v584_v43  ;;  %v562_v62 = vmul.f32 %v561_v47, %v554_v42  ;;  %vm583_vm8 = vcmp.eq.f32.partialorder %v582_v46, 8.507059e+37  ;;  %v1777_v42 = vcvt.s32.f32 %v309_v41 }
 0x1da   : > { %v446_v8 = vpop.permute.xlu0 %445  ;;  %v441_v25 = vadd.f32 %v440_v20, %v432_v16 }
 0x1db   : > { %v602_v54 = vmul.f32 %v601_v2, %v562_v62  ;;  %vm447_vm11 = vcmp.eq.s32.totalorder %v446_v8, 1 }
 0x1dc   : > { %v449_v22 = vsel %vm447_vm11, %v448_v14, 0.0 }
 0x1dd   : > { %v1227_v21 = vpop.eup %1226 }
 0x1de   : > { %v574_v26 = vmul.f32 %v1227_v21, %v572_v7  ;;  %vm579_vm3 = vweird.f32 %v1227_v21  ;;  %v617_v7 = vsub.f32 %v1664_v29, %v613_v56 }
 0x1df   : > { %vm580_vm7 = vmor %vm578_vm5, %vm579_vm3 }
 0x1e0   : > { %v575_v38 = vsub.f32 1.0, %v574_v26  ;;  %v618_v19 = vmin.f32 %v616_v1, %v617_v7  ;;  %v450_v26 = vadd.f32 %v449_v22, %v441_v25 }
 0x1e2   : > { %v576_v45 = vmul.f32 %v1227_v21, %v575_v38  ;;  %v619_v31 = vmin.f32 %v615_v18, %v618_v19  ;;  %v1435_v38 = vmov 0.0  }
 0x1e3   : > { %907 = vst [vmem:[%s1819_s8 + $0x6] sm:$0x3] %v1435_v38 }
 0x1e4   : > { %v577_v52 = vadd.f32 %v1227_v21, %v576_v45  ;;  %vm620_vm13 = vcmp.gt.f32.partialorder %v619_v31, 1e-09 }
 0x1e5   : > { %v1772_v39 = vsel %vm620_vm13, 1.0, %v1435_v38 }
 0x1e6   : > { %v581_v49 = vsel %vm580_vm7, %v1227_v21, %v577_v52  ;;  %v455_v21 = vpop.permute.xlu1 %454 }
 0x1e7   : > { %v586_v63 = vsel %vm583_vm8, %v585_v58, %v581_v49  ;;  %vm456_vm12 = vcmp.eq.s32.totalorder %v455_v21, 1 }
 0x1e8   : > { %v587_v4 = vmul.f32 %v586_v63, %v1711_v57 }
 0x1ea   : > { %v603_v11 = vmul.f32 %v587_v4, %v1711_v57  ;;  %v457_v57 = vperm.slane %v1723_v3, 7 }
 0x1ec   : > { %v604_v15 = vadd.f32 %v603_v11, %v602_v54  ;;  %v458_v35 = vsel %vm456_vm12, %v457_v57, 0.0 }
 0x1ed   : > { %v459_v36 = vadd.f32 %v458_v35, %v450_v26 }
 0x1ee   : > { %v605_v17 = vsub.f32 %v1714_v59, %v604_v15 }
 0x1f0   : > { %v1764_v24 = vmax.f32 %v605_v17, 0.0 }
 0x1f2   : > { %v607_v27 = vmul.f32 %v1764_v24, %v1764_v24 }
 0x1f4   : > { %v608_v33 = vmul.f32 %v607_v27, %v607_v27 }
 0x1f6   : > { %v609_v59 = vmul.f32 %v608_v33, %v607_v27 }
 0x1f8   : > { %v1769_v37 = vmul.f32 %v609_v59, %v459_v36 }
 0x1fa   : > { %v623_v3 = vmul.f32 %v1772_v39, %v1769_v37 }
 0x1fc   : > { %624 = vmax.xlane.f32.xlu2 %v623_v3 }
 0x26f   : > { %v625_v43 = vpop.xlane.xlu2 %624 }
 0x270   : > { %vm626_vm14 = vcmp.eq.f32.partialorder %v623_v3, %v625_v43 }
 0x271   : > { %v627_v44 = vsel %vm626_vm14, %v1777_v42, 128.0 }
 0x272   : > { %628 = vmin.xlane.f32.xlu0 %v627_v44 }
 0x2e5   : > { %v629_v45 = vpop.xlane.xlu0 %628 }
 0x2e6   : > { %vm630_vm15 = vcmp.eq.f32.partialorder %v1777_v42, %v629_v45 }
 0x2e7   : > { %v634_v46 = vsel %vm630_vm15, -1e+30, %v623_v3  ;;  %v1109_v23 = vsel %vm630_vm15, 1.0, %v1435_v38 }
 0x2e8   : > { %635 = vmax.xlane.f32.xlu1 %v634_v46 }
 0x35b   : > { %v636_v47 = vpop.xlane.xlu1 %635 }
 0x35c   : > { %vm637_vm0 = vcmp.eq.f32.partialorder %v634_v46, %v636_v47 }
 0x35d   : > { %v638_v48 = vsel %vm637_vm0, %v1777_v42, 128.0 }
 0x35e   : > { %639 = vmin.xlane.f32.xlu2 %v638_v48 }
 0x3d1   : > { %v640_v50 = vpop.xlane.xlu2 %639 }
 0x3d2   : > { %vm641_vm1 = vcmp.eq.f32.partialorder %v1777_v42, %v640_v50 }
 0x3d3   : > { %v1110_v52 = vsel %vm641_vm1, 1.0, %v1435_v38  ;;  %v645_v53 = vsel %vm641_vm1, -1e+30, %v634_v46 }
 0x3d4   : > { %v644_v55 = vadd.f32 %v1110_v52, %v1109_v23  ;;  %646 = vmax.xlane.f32.xlu2 %v645_v53 }
 0x447   : > { %v647_v56 = vpop.xlane.xlu2 %646 }
 0x448   : > { %vm648_vm2 = vcmp.eq.f32.partialorder %v645_v53, %v647_v56 }
 0x449   : > { %v649_v58 = vsel %vm648_vm2, %v1777_v42, 128.0 }
 0x44a   : > { %650 = vmin.xlane.f32.xlu0 %v649_v58 }
 0x4bd   : > { %v651_v60 = vpop.xlane.xlu0 %650 }
 0x4be   : > { %vm652_vm3 = vcmp.eq.f32.partialorder %v1777_v42, %v651_v60 }
 0x4bf   : > { %v1111_v61 = vsel %vm652_vm3, 1.0, %v1435_v38  ;;  %v656_v62 = vsel %vm652_vm3, -1e+30, %v645_v53 }
 0x4c0   : > { %v655_v49 = vadd.f32 %v1111_v61, %v644_v55  ;;  %657 = vmax.xlane.f32.xlu1 %v656_v62 }
 0x533   : > { %v658_v63 = vpop.xlane.xlu1 %657 }
 0x534   : > { %vm659_vm4 = vcmp.eq.f32.partialorder %v656_v62, %v658_v63 }
 0x535   : > { %v660_v2 = vsel %vm659_vm4, %v1777_v42, 128.0 }
 0x536   : > { %661 = vmin.xlane.f32.xlu2 %v660_v2 }
 0x5a9   : > { %v662_v51 = vpop.xlane.xlu2 %661 }
 0x5aa   : > { %vm663_vm5 = vcmp.eq.f32.partialorder %v1777_v42, %v662_v51  ;;  %v1436_v51 = vmov 5  }
 0x5ab   : > { %v1112_v4 = vsel %vm663_vm5, 1.0, %v1435_v38  ;;  %v667_v5 = vsel %vm663_vm5, -1e+30, %v656_v62  ;;  %1218 = vset.pattern.permute.xlu0 %v1436_v51 }
 0x5ac   : > { %v666_v1 = vadd.f32 %v1112_v4, %v655_v49  ;;  %668 = vmax.xlane.f32.xlu0 %v667_v5 }
 0x61f   : > { %v669_v7 = vpop.xlane.xlu0 %668 }
 0x620   : > { %vm670_vm6 = vcmp.eq.f32.partialorder %v667_v5, %v669_v7 }
 0x621   : > { %v671_v30 = vsel %vm670_vm6, %v1777_v42, 128.0 }
 0x622   : > { %672 = vmin.xlane.f32.xlu1 %v671_v30 }
 0x695   : > { %v673_v8 = vpop.xlane.xlu1 %672 }
 0x696   : > { %vm674_vm7 = vcmp.eq.f32.partialorder %v1777_v42, %v673_v8 }
 0x697   : > { %v1113_v9 = vsel %vm674_vm7, 1.0, %v1435_v38  ;;  %v678_v10 = vsel %vm674_vm7, -1e+30, %v667_v5 }
 0x698   : > { %v677_v54 = vadd.f32 %v1113_v9, %v666_v1  ;;  %679 = vmax.xlane.f32.xlu2 %v678_v10  ;;  %v780_v1 = vrot.slane %v1764_v24, 4 }
 0x69a   : > { %v781_v7 = vmax.f32 %v1764_v24, %v780_v1 }
 0x69c   : > { %v782_v30 = vrot.slane %v781_v7, 2 }
 0x69e   : > { %v783_v8 = vmax.f32 %v781_v7, %v782_v30 }
 0x6a0   : > { %v784_v9 = vrot.slane %v783_v8, 1 }
 0x70b   : > { %v680_v11 = vpop.xlane.xlu2 %679 }
 0x70c   : > { %vm681_vm8 = vcmp.eq.f32.partialorder %v678_v10, %v680_v11 }
 0x70d   : > { %v682_v12 = vsel %vm681_vm8, %v1777_v42, 128.0 }
 0x70e   : > { %683 = vmin.xlane.f32.xlu0 %v682_v12 }
 0x781   : > { %v684_v13 = vpop.xlane.xlu0 %683 }
 0x782   : > { %vm685_vm9 = vcmp.eq.f32.partialorder %v1777_v42, %v684_v13 }
 0x783   : > { %v1114_v14 = vsel %vm685_vm9, 1.0, %v1435_v38  ;;  %v689_v15 = vsel %vm685_vm9, -1e+30, %v678_v10  ;;  %v1826_v10 = vshrl.u32 %v308_v40, 7 }
 0x784   : > { %v688_v16 = vadd.f32 %v1114_v14, %v677_v54  ;;  %690 = vmax.xlane.f32.xlu1 %v689_v15 }
 0x785   : > { %v1829_v54 = vcvt.s32.f32 %v1826_v10 }
 0x7f7   : > { %v691_v17 = vpop.xlane.xlu1 %690 }
 0x7f8   : > { %vm692_vm10 = vcmp.eq.f32.partialorder %v689_v15, %v691_v17 }
 0x7f9   : > { %v693_v18 = vsel %vm692_vm10, %v1777_v42, 128.0 }
 0x7fa   : > { %694 = vmin.xlane.f32.xlu2 %v693_v18 }
 0x86d   : > { %v695_v19 = vpop.xlane.xlu2 %694 }
 0x86e   : > { %vm696_vm11 = vcmp.eq.f32.partialorder %v1777_v42, %v695_v19 }
 0x86f   : > { %v1115_v20 = vsel %vm696_vm11, 1.0, %v1435_v38  ;;  %v700_v21 = vsel %vm696_vm11, -1e+30, %v689_v15 }
 0x870   : > { %v699_v22 = vadd.f32 %v1115_v20, %v688_v16  ;;  %701 = vmax.xlane.f32.xlu0 %v700_v21 }
 0x8e3   : > { %v702_v25 = vpop.xlane.xlu0 %701 }
 0x8e4   : > { %vm703_vm12 = vcmp.eq.f32.partialorder %v700_v21, %v702_v25 }
 0x8e5   : > { %v704_v57 = vsel %vm703_vm12, %v1777_v42, 128.0 }
 0x8e6   : > { %705 = vmin.xlane.f32.xlu1 %v704_v57 }
 0x959   : > { %v706_v26 = vpop.xlane.xlu1 %705 }
 0x95a   : > { %vm707_vm13 = vcmp.eq.f32.partialorder %v1777_v42, %v706_v26 }
 0x95b   : > { %v1116_v27 = vsel %vm707_vm13, 1.0, %v1435_v38  ;;  %v711_v31 = vsel %vm707_vm13, -1e+30, %v700_v21 }
 0x95c   : > { %v710_v33 = vadd.f32 %v1116_v27, %v699_v22  ;;  %712 = vmax.xlane.f32.xlu2 %v711_v31 }
 0x9cf   : > { %v713_v35 = vpop.xlane.xlu2 %712 }
 0x9d0   : > { %vm714_vm14 = vcmp.eq.f32.partialorder %v711_v31, %v713_v35 }
 0x9d1   : > { %v715_v36 = vsel %vm714_vm14, %v1777_v42, 128.0 }
 0x9d2   : > { %716 = vmin.xlane.f32.xlu0 %v715_v36 }
 0xa45   : > { %v717_v59 = vpop.xlane.xlu0 %716 }
 0xa46   : > { %vm718_vm15 = vcmp.eq.f32.partialorder %v1777_v42, %v717_v59 }
 0xa47   : > { %v1117_v3 = vsel %vm718_vm15, 1.0, %v1435_v38  ;;  %v722_v41 = vsel %vm718_vm15, -1e+30, %v711_v31 }
 0xa48   : > { %v721_v43 = vadd.f32 %v1117_v3, %v710_v33  ;;  %723 = vmax.xlane.f32.xlu1 %v722_v41 }
 0xabb   : > { %v724_v44 = vpop.xlane.xlu1 %723 }
 0xabc   : > { %vm725_vm0 = vcmp.eq.f32.partialorder %v722_v41, %v724_v44 }
 0xabd   : > { %v726_v45 = vsel %vm725_vm0, %v1777_v42, 128.0 }
 0xabe   : > { %727 = vmin.xlane.f32.xlu2 %v726_v45 }
 0xb31   : > { %v728_v46 = vpop.xlane.xlu2 %727 }
 0xb32   : > { %vm729_vm1 = vcmp.eq.f32.partialorder %v1777_v42, %v728_v46 }
 0xb33   : > { %v1118_v47 = vsel %vm729_vm1, 1.0, %v1435_v38  ;;  %v733_v48 = vsel %vm729_vm1, -1e+30, %v722_v41 }
 0xb34   : > { %v732_v50 = vadd.f32 %v1118_v47, %v721_v43  ;;  %734 = vmax.xlane.f32.xlu0 %v733_v48 }
 0xba7   : > { %v735_v23 = vpop.xlane.xlu0 %734 }
 0xba8   : > { %vm736_vm2 = vcmp.eq.f32.partialorder %v733_v48, %v735_v23 }
 0xba9   : > { %v737_v52 = vsel %vm736_vm2, %v1777_v42, 128.0 }
 0xbaa   : > { %738 = vmin.xlane.f32.xlu1 %v737_v52 }
 0xc1d   : > { %v739_v53 = vpop.xlane.xlu1 %738 }
 0xc1e   : > { %vm740_vm3 = vcmp.eq.f32.partialorder %v1777_v42, %v739_v53 }
 0xc1f   : > { %v1119_v55 = vsel %vm740_vm3, 1.0, %v1435_v38  ;;  %v744_v56 = vsel %vm740_vm3, -1e+30, %v733_v48 }
 0xc20   : > { %v743_v58 = vadd.f32 %v1119_v55, %v732_v50  ;;  %745 = vmax.xlane.f32.xlu2 %v744_v56 }
 0xc93   : > { %v746_v60 = vpop.xlane.xlu2 %745 }
 0xc94   : > { %vm747_vm4 = vcmp.eq.f32.partialorder %v744_v56, %v746_v60 }
 0xc95   : > { %v748_v61 = vsel %vm747_vm4, %v1777_v42, 128.0 }
 0xc96   : > { %749 = vmin.xlane.f32.xlu0 %v748_v61 }
 0xcaa   : > { %770 = vperm.xlu0 %1218, %v1617_v0  }
 0xcb2   : > { %1219 = vset.pattern.permute.xlu0 %v1432_v6  ;;  %v785_v6 = vmax.f32 %v783_v8, %v784_v9 }
 0xcb4   : > { %vm786_vm7 = vcmp.eq.f32.partialorder %v1764_v24, %v785_v6 }
 0xcb5   : > { %v787_v11 = vsel %vm786_vm7, %v1829_v54, 8.0 }
 0xcb6   : > { %v788_v12 = vrot.slane %v787_v11, 4 }
 0xcb8   : > { %v789_v14 = vmin.f32 %v787_v11, %v788_v12 }
 0xcba   : > { %v790_v17 = vrot.slane %v789_v14, 2 }
 0xcbc   : > { %v791_v20 = vmin.f32 %v789_v14, %v790_v17 }
 0xcbe   : > { %v792_v25 = vrot.slane %v791_v20, 1 }
 0xcc0   : > { %v793_v27 = vmin.f32 %v791_v20, %v792_v25 }
 0xcc2   : > { %vm794_vm10 = vcmp.eq.f32.partialorder %v1829_v54, %v793_v27 }
 0xcc3   : > { %v1122_v35 = vsel %vm794_vm10, 1.0, %v1435_v38 }
 0xd09   : > { %v750_v62 = vpop.xlane.xlu0 %749 }
 0xd0a   : > { %vm751_vm5 = vcmp.eq.f32.partialorder %v1777_v42, %v750_v62 }
 0xd0b   : > { %v1120_v49 = vsel %vm751_vm5, 1.0, %v1435_v38  ;;  %v755_v63 = vsel %vm751_vm5, -1e+30, %v744_v56 }
 0xd0c   : > { %v754_v2 = vadd.f32 %v1120_v49, %v743_v58  ;;  %756 = vmax.xlane.f32.xlu1 %v755_v63 }
 0xd1c   : > { %v771_v40 = vpop.permute.xlu0 %770 }
 0xd7f   : > { %v757_v4 = vpop.xlane.xlu1 %756 }
 0xd80   : > { %vm758_vm6 = vcmp.eq.f32.partialorder %v755_v63, %v757_v4 }
 0xd81   : > { %v759_v5 = vsel %vm758_vm6, %v1777_v42, 128.0 }
 0xd82   : > { %760 = vmin.xlane.f32.xlu2 %v759_v5 }
 0xdf5   : > { %v761_v13 = vpop.xlane.xlu2 %760 }
 0xdf6   : > { %vm762_vm8 = vcmp.eq.f32.partialorder %v1777_v42, %v761_v13 }
 0xdf7   : > { %v1121_v15 = vsel %vm762_vm8, 1.0, %v1435_v38 }
 0xdf8   : > { %v765_v16 = vadd.f32 %v1121_v15, %v754_v2 }
 0xdfa   : > { %vm766_vm9 = vcmp.gt.f32.partialorder %v765_v16, 1.0 }
 0xdfb   : > { %v767_v18 = vsel %vm766_vm9, 0.0, %v765_v16 }
 0xdfc   : > { %v768_v19 = vmul.f32 %v1772_v39, %v767_v18 }
 0xdfe   : > { %v773_v21 = vmul.f32 %v771_v40, %v768_v19 }
 0xe00   : > { %v774_v22 = vrot.slane %v773_v21, 4 }
 0xe02   : > { %v775_v57 = vadd.f32 %v774_v22, %v773_v21 }
 0xe04   : > { %v776_v26 = vrot.slane %v775_v57, 2 }
 0xe06   : > { %v777_v31 = vadd.f32 %v776_v26, %v775_v57 }
 0xe08   : > { %v778_v33 = vrot.slane %v777_v31, 1 }
 0xe0a   : > { %v779_v42 = vadd.f32 %v778_v33, %v777_v31 }
 0xe0c   : > { %vm797_vm11 = vcmp.gt.f32.partialorder %v779_v42, 1.0 }
 0xe0d   : > { %v800_v36 = vsel %vm797_vm11, %v1122_v35, %v773_v21 }
 0xe0e   : > { %v801_v59 = vrot.slane %v800_v36, 4  ;;  %v865_v39 = vmul.f32 %v800_v36, %v1764_v24  ;;  %v1840_v3 = vmul.f32 %v800_v36, %v1769_v37 }
 0xe10   : > { %v802_v41 = vadd.f32 %v801_v59, %v800_v36  ;;  %v808_v43 = vmax.f32 %v800_v36, %v801_v59  ;;  %868 = vmax.xlane.f32.xlu2 %v865_v39  ;;  %866 = vmax.xlane.f32.xlu1 %v1840_v3 }
 0xe12   : > { %v803_v44 = vrot.slane %v802_v41, 2  ;;  %v809_v45 = vrot.slane %v808_v43, 2 }
 0xe14   : > { %v804_v46 = vadd.f32 %v803_v44, %v802_v41  ;;  %v810_v47 = vmax.f32 %v808_v43, %v809_v45 }
 0xe16   : > { %v805_v48 = vrot.slane %v804_v46, 1  ;;  %v811_v50 = vrot.slane %v810_v47, 1 }
 0xe18   : > { %v812_v23 = vmax.f32 %v810_v47, %v811_v50  ;;  %v1843_v52 = vadd.f32 %v805_v48, %v804_v46 }
 0xe1a   : > { %vm813_vm12 = vcmp.eq.f32.partialorder %v800_v36, %v812_v23  ;;  %902 = vst [vmem:[%s1819_s8 + $0x1] sm:$0x1] %v1843_v52  ;;  %vm893_vm2 = vcmp.gt.f32.partialorder %v1843_v52, 0.0 }
 0xe1b   : > { %v814_v24 = vsel %vm813_vm12, %v1829_v54, 8.0 }
 0xe1c   : > { %v815_v37 = vrot.slane %v814_v24, 4 }
 0xe1e   : > { %v816_v53 = vmin.f32 %v814_v24, %v815_v37  ;;  %v314_v24 = vadd.s32 8, %v1826_v10 }
 0xe20   : > { %v817_v55 = vrot.slane %v816_v53, 2 }
 0xe22   : > { %v818_v56 = vmin.f32 %v816_v53, %v817_v55  ;;  %v315_v55 = vcvt.s32.f32 %v314_v24 }
 0xe24   : > { %v819_v58 = vrot.slane %v818_v56, 1 }
 0xe26   : > { %v820_v60 = vmin.f32 %v818_v56, %v819_v58 }
 0xe28   : > { %vm821_vm13 = vcmp.eq.f32.partialorder %v1829_v54, %v820_v60 }
 0xe29   : > { %853 = vperm.xlu1 %1216, %v1617_v0   ;;  %v1123_v61 = vsel %vm821_vm13, 1.0, %v1435_v38 }
 0xe2a   : > { %v824_v62 = vmul.f32 %v1123_v61, %v1671_v32  ;;  %v831_v49 = vmul.f32 %v1123_v61, %v1674_v34  ;;  %v838_v63 = vmul.f32 %v1123_v61, %v1662_v28  ;;  %v845_v2 = vmul.f32 %v1123_v61, %v1664_v29 }
 0xe2c   : > { %v825_v51 = vrot.slane %v824_v62, 4  ;;  %v832_v4 = vrot.slane %v831_v49, 4  ;;  %v839_v5 = vrot.slane %v838_v63, 4  ;;  %v846_v1 = vrot.slane %v845_v2, 4 }
 0xe2e   : > { %v826_v7 = vadd.f32 %v825_v51, %v824_v62  ;;  %v833_v30 = vadd.f32 %v832_v4, %v831_v49  ;;  %v840_v8 = vadd.f32 %v839_v5, %v838_v63  ;;  %v847_v9 = vadd.f32 %v846_v1, %v845_v2 }
 0xe30   : > { %v827_v6 = vrot.slane %v826_v7, 2  ;;  %v834_v0 = vrot.slane %v833_v30, 2  ;;  %v841_v38 = vrot.slane %v840_v8, 2  ;;  %v848_v32 = vrot.slane %v847_v9, 2 }
 0xe32   : > { %v828_v34 = vadd.f32 %v827_v6, %v826_v7  ;;  %v835_v28 = vadd.f32 %v834_v0, %v833_v30  ;;  %v842_v11 = vadd.f32 %v841_v38, %v840_v8  ;;  %v849_v29 = vadd.f32 %v848_v32, %v847_v9 }
 0xe34   : > { %v829_v12 = vrot.slane %v828_v34, 1  ;;  %v836_v13 = vrot.slane %v835_v28, 1  ;;  %v843_v14 = vrot.slane %v842_v11, 1  ;;  %v850_v15 = vrot.slane %v849_v29, 1 }
 0xe36   : > { %v830_v16 = vadd.f32 %v829_v12, %v828_v34  ;;  %v837_v17 = vadd.f32 %v836_v13, %v835_v28  ;;  %v844_v40 = vadd.f32 %v843_v14, %v842_v11  ;;  %v851_v18 = vadd.f32 %v850_v15, %v849_v29 }
 0xe38   : > { %903 = vst [vmem:[%s1819_s8 + $0x2] sm:$0x1] %v830_v16 }
 0xe39   : > { %904 = vst [vmem:[%s1819_s8 + $0x3] sm:$0x1] %v837_v17 }
 0xe3a   : > { %905 = vst [vmem:[%s1819_s8 + $0x4] sm:$0x1] %v844_v40 }
 0xe3b   : > { %906 = vst [vmem:[%s1819_s8 + $0x5] sm:$0x1] %v851_v18 }
 0xe83   : > { %v867_v19 = vpop.xlane.xlu1 %866  ;;  %v869_v35 = vpop.xlane.xlu2 %868 }
 0xe84   : > { %v870_v20 = vadd.f32 1e-09, %v867_v19 }
 0xe86   : > { %1228 = vrcp.f32 %v870_v20  ;;  %v882_v57 = vand.u32 2147483648, %v870_v20  ;;  %v880_v27 = vand.u32 2147483647, %v870_v20  ;;  %vm876_vm15 = vweird.f32 %v870_v20 }
 0xe88   : > { %v883_v33 = vor.u32 1.1754944e-38, %v882_v57  ;;  %vm881_vm1 = vcmp.eq.f32.partialorder %v880_v27, 8.507059e+37 }
 0xe8c   : > { %v1229_v21 = vpop.eup %1228 }
 0xe8d   : > { %v872_v22 = vmul.f32 %v1229_v21, %v870_v20  ;;  %vm877_vm14 = vweird.f32 %v1229_v21 }
 0xe8e   : > { %vm878_vm0 = vmor %vm876_vm15, %vm877_vm14 }
 0xe8f   : > { %v873_v25 = vsub.f32 1.0, %v872_v22 }
 0xe91   : > { %v874_v26 = vmul.f32 %v1229_v21, %v873_v25 }
 0xe93   : > { %v875_v31 = vadd.f32 %v1229_v21, %v874_v26 }
 0xe95   : > { %v879_v42 = vsel %vm878_vm0, %v1229_v21, %v875_v31 }
 0xe96   : > { %v884_v36 = vsel %vm881_vm1, %v883_v33, %v879_v42 }
 0xe97   : > { %v885_v59 = vmul.f32 %v884_v36, %v869_v35 }
 0xe99   : > { %v886_v39 = vmul.f32 %v885_v59, %v1840_v3 }
 0xe9b   : > { %v887_v41 = vrot.slane %v886_v39, 4  ;;  %v854_v43 = vpop.permute.xlu1 %853 }
 0xe9c   : > { %v856_v44 = vmul.f32 %v1123_v61, %v854_v43 }
 0xe9d   : > { %v888_v45 = vmax.f32 %v886_v39, %v887_v41 }
 0xe9e   : > { %v857_v46 = vrot.slane %v856_v44, 4 }
 0xe9f   : > { %v889_v47 = vrot.slane %v888_v45, 2 }
 0xea0   : > { %v858_v48 = vadd.f32 %v857_v46, %v856_v44 }
 0xea1   : > { %v890_v50 = vmax.f32 %v888_v45, %v889_v47 }
 0xea2   : > { %v859_v23 = vrot.slane %v858_v48, 2 }
 0xea3   : > { %v891_v37 = vrot.slane %v890_v50, 1 }
 0xea4   : > { %v860_v53 = vadd.f32 %v859_v23, %v858_v48 }
 0xea5   : > { %v892_v56 = vmax.f32 %v890_v50, %v891_v37 }
 0xea6   : > { %v861_v3 = vrot.slane %v860_v53, 1 }
 0xea7   : > { %v894_v60 = vsel %vm893_vm2, %v892_v56, 0.0 }
 0xea8   : > { %v862_v58 = vadd.f32 %v861_v3, %v860_v53 }
 0xeaa   : > { %v863_v10 = vmax.f32 %v862_v58, 0.0 }
 0xeac   : > { %vm895_vm3 = vcmp.eq.f32.partialorder %v1829_v54, %v863_v10  ;;  %vm1881_vm4 = vcmp.eq.f32.partialorder %v315_v55, %v863_v10  ;;  %901 = vst [vmem:[%s1819_s8] sm:$0x1] %v863_v10 }
 0xead   : > { %v897_v62 = vsel %vm895_vm3, %v894_v60, 0.0  ;;  %v898_v49 = vsel %vm1881_vm4, %v894_v60, 0.0 }
 0xeae   : > { %1347 = shalt.err (!%p1344_p5)
}
 0xeaf   : > { %1139 = dma.vmem_to_hbm [thread:$0]  (%p1510_p11), %s927_s14, 128, %s929_s5, %s909_s0   ;;  %899 = vst [vmem:[%s1872_s19] sm:$0xff] %v897_v62 }
 0xeb0   : > { %900 = vst [vmem:[%s1872_s19 + $0x8] sm:$0xff] %v898_v49  ;;  %s914_s8 = scalar_lea.sflag [#allocation10], %s1595_s28  ;;  %s1362_s11 = sshra.s32 %s1878_s29, 4  ;;  %s1363_s11 = int_to_ptr.hbm [resolvable:$true] %s1362_s11 }
 0xeb1   : > { %s1364_s17 = scalar_lea.hbm %s1363_s11, 16  ;;  %s1368_s1 = scalar_lea.hbm %s1937_s4, 32 }
 0xeb2   : > { %p1365_p7 = scmp.ne.s32.totalorder %s1363_s11, %s1364_s17  ;;  %p1369_p0 = scmp.lt.s32.totalorder %s1363_s11, %s1937_s4 }
 0xeb3   : > { %p1370_p6 = scmp.lt.s32.totalorder %s1368_s1, %s1364_s17 }
 0xeb4   : > { %p1366_p8 = pnand %p1365_p7, %p1510_p11 }
 0xeb5   : > { %p1371_p13 = por %p1370_p6, %p1369_p0 }
 0xeb6   : > { %p1367_p10 = pneg %p1366_p8 }
 0xeb8   : > { %p1372_p1 = pnand %p1371_p13, %p1367_p10 }
 0xeba   : > { %1375 = shalt.err (!%p1372_p1)
}
 0xebb   : > { %s1437_s28 = smov 128   ;;  %s1438_s14 = smov 8  }
 0xebc   : > { %1140 = dma.vmem_to_hbm [thread:$0]  (%p1510_p11), %s1876_s12, 256, %s1878_s29, %s914_s8, %s1437_s28, %s1437_s28, %s1438_s14  }
 0xebd PF: > { %s957_s5 = sand.u32 1, %s1410_s15   ;;  %p1154_p2 = pnand %p1094_p9, %p1514_p12 }
 0xebe   : > { %s958_s19 = scalar_lea.sflag [#allocation4], %s957_s5 }
 0xebf   : > { %p1155_p3 = pneg %p1154_p2 }
 0xec1   : > { %1401 = dma.done.wait (%p1155_p3), %s958_s19, 128  }
 0xec2   : > { %1403 = vsyncadd (%p1155_p3), %s958_s19, 4294967168  ;;  %s968_s0 = scalar_lea.sflag [#allocation10], %s957_s5 }
 0xec3   : > { %1405 = dma.done.wait (%p1155_p3), %s968_s0, 256  }
 0xec4   : > { %1407 = vsyncadd (%p1155_p3), %s968_s0, 4294967040  ;;  %s1956_s13 = sld [smem:[#allocation15_spill]]  ;;  %p24_p11 = scmp.ge.s32.totalorder %s1489_s21, 4  }
 0xec5   : > { %s1957_s17 = sld [smem:[#allocation16_spill]]  ;;  %s1958_s15 = smov %s1414_s16 }
 0xec6   : > { %s1960_s18 = smov %s1489_s21  ;;  %26 = sbr.rel (!%p24_p11) target bundleno = 12 (0xc), region = 118 }
 0xeca   : > { %s1959_s16 = smov %s1956_s13 }
 0xecb   :  { %974 = vsyncpa [#allocation3], 1 }
 0xecc   :  { %976 = vsyncpa [#allocation3 + $0x1], 1 }
 0xecd   :  { %977 = vsyncpa [#allocation6], 1 }
 0xece   :  { %979 = vsyncpa [#allocation6 + $0x1], 1 }
 0xecf   :  { %980 = vsyncpa [#allocation4], 1 }
 0xed0   :  { %982 = vsyncpa [#allocation4 + $0x1], 1 }
 0xed1   :  { %983 = vsyncpa [#allocation10], 1 }
 0xed2   :  { %985 = vsyncpa [#allocation10 + $0x1], 1 }

</bundles_post_ra>
